<compile_context>
chip_gen: v7x
topology: tpu7x:2x2x1
jax: 0.10.0
libtpu: 0.0.40
codegen_flags: <defaults>
</compile_context>

<pallas_src>
import functools

import jax
import jax.numpy as jnp
from jax.experimental import pallas as pl
from jax.experimental.pallas import tpu as pltpu


_VMEM = pl.BlockSpec(memory_space=pltpu.MemorySpace.VMEM)

_LANE = 128            # native lane width
_BF16_SUBLANES = 16    # bf16 packs 16 sublanes per vreg


def _round_up(x, m):
    return ((x + m - 1) // m) * m


# ----------------------------------------------------------------------------
# Single fused kernel:
#   conv(3x3, s2) via im2col GEMM + ReLU -> flatten+projection Linear (one
#   matmul) -> SODAMLP (Linear -> BatchNorm1d(train) -> ReLU -> Linear)
# ----------------------------------------------------------------------------
def _fused_kernel(n_batch, p_pad,
                  patches_ref,   # (N*P_pad, K_pad)        bf16, row = n*P_pad + p
                  wconv_ref,     # (K_pad, Cc_pad)         bf16
                  bconv_ref,     # (1, Cc_pad)             f32
                  w3_ref,        # (P_pad*Cc_pad, D_pad)   bf16, folded flatten+proj
                  w1_ref,        # (D_pad, HID_pad)        bf16
                  w2_ref,        # (HID_pad, D_pad)        bf16
                  b2_ref,        # (1, D_pad)              f32
                  o_ref):        # (N, D_pad)              f32
    cc_pad = wconv_ref.shape[1]

    # --- encoder conv as one lane-dense im2col GEMM (bf16 operands, f32 acc) ---
    conv = jnp.dot(patches_ref[...], wconv_ref[...],
                   preferred_element_type=jnp.float32)
    conv = jnp.maximum(conv + bconv_ref[...], 0.0)      # (N*P_pad, Cc_pad), f32
    # conv[n*P_pad + p, c] == ReLU(Conv2d(x))[n, c, oh, ow],  p = oh*OW + ow

    # Single bf16 cast right after the ReLU, then collapse per-image rows into
    # lanes (both minor dims are 128-multiples -> cheap, supported relayout).
    conv_bf = conv.astype(jnp.bfloat16).reshape(n_batch, p_pad * cc_pad)

    # --- encoder NCHW-flatten + projection Linear as ONE long-K matmul ---
    # Padded rows (p >= OH*OW) and padded channels (c >= Cc) hit zero rows of
    # w3_flat, so they contribute exactly zero regardless of the conv bias.
    feats = jnp.dot(conv_bf, w3_ref[...], preferred_element_type=jnp.float32)

    # --- SODAMLP ---
    # First Linear: b1 omitted (zero by weight_init; train-mode BN mean
    # subtraction cancels any constant per-feature bias exactly).
    z = jnp.dot(feats.astype(jnp.bfloat16), w1_ref[...],
                preferred_element_type=jnp.float32)
    # BatchNorm1d, train mode: biased batch variance, eps=1e-5, gamma=1, beta=0.
    # Padded hidden columns are identically zero -> stay zero through BN/ReLU.
    mean = jnp.mean(z, axis=0, keepdims=True)
    var = jnp.mean((z - mean) ** 2, axis=0, keepdims=True)
    h = jnp.maximum((z - mean) * jax.lax.rsqrt(var + 1e-5), 0.0)
    o_ref[...] = jnp.dot(h.astype(jnp.bfloat16), w2_ref[...],
                         preferred_element_type=jnp.float32) + b2_ref[...]


# ----------------------------------------------------------------------------
# Deterministic parameter init (mirrors weight_init) + layout folding / padding.
# ----------------------------------------------------------------------------
def _orthogonal(key, rows, cols, gain=1.0):
    """nn.init.orthogonal_-style init for a (rows, cols) matrix."""
    flat_shape = (rows, cols) if rows >= cols else (cols, rows)
    a = jax.random.normal(key, flat_shape, dtype=jnp.float32)
    q, r = jnp.linalg.qr(a)
    d = jnp.diag(r)
    q = q * jnp.where(d == 0.0, 1.0, jnp.sign(d))[None, :]
    if rows < cols:
        q = q.T
    return (gain * q[:rows, :cols]).astype(jnp.float32)


def make_params(key, in_c, img_hw, conv_c, enc_out_dim, hidden_dim):
    k1, k2, k3, k4 = jax.random.split(key, 4)
    relu_gain = 2.0 ** 0.5                       # nn.init.calculate_gain('relu')
    kk, stride = 3, 2
    oh = (img_hw - kk) // stride + 1
    ow = oh
    p = oh * ow
    kdim = in_c * kk * kk
    feat_dim = conv_c * p

    # Encoder Conv2d: zero weight except orthogonal*gain center tap, zero bias.
    conv_w = jnp.zeros((conv_c, in_c, kk, kk), jnp.float32)
    conv_w = conv_w.at[:, :, kk // 2, kk // 2].set(
        _orthogonal(k1, conv_c, in_c, gain=relu_gain))
    conv_b = jnp.zeros((conv_c,), jnp.float32)
    # Encoder projection + SODAMLP linears, PyTorch (out, in) layout, zero bias.
    proj_w = _orthogonal(k2, enc_out_dim, feat_dim)    # (D, Cc*OH*OW)
    w1 = _orthogonal(k3, hidden_dim, enc_out_dim)      # (HID, D)
    w2 = _orthogonal(k4, enc_out_dim, hidden_dim)      # (D, HID)
    b2 = jnp.zeros((enc_out_dim,), jnp.float32)

    torch_params = dict(conv_w=conv_w, conv_b=conv_b, proj_w=proj_w,
                        w1=w1, w2=w2, b2=b2)

    # ---- padded / folded kernel layouts (all plumbing done once, at init) ----
    k_pad = _round_up(kdim, _LANE)                 # im2col K, lane-padded
    cc_pad = _round_up(conv_c, _LANE)              # conv channels, lane-padded
    p_pad = _round_up(p, _BF16_SUBLANES)           # per-image patch rows
    d_pad = _round_up(enc_out_dim, _LANE)
    hid_pad = _round_up(hidden_dim, _LANE)

    # conv weight flattened with k = c_in*9 + kh*3 + kw (PyTorch flatten order).
    wconv = jnp.pad(conv_w.reshape(conv_c, kdim).T,
                    ((0, k_pad - kdim), (0, cc_pad - conv_c)))      # (K_pad, Cc_pad)
    bconv = jnp.pad(conv_b, (0, cc_pad - conv_c)).reshape(1, cc_pad)

    # Projection weight folded so the kernel's (n, p*Cc_pad + c) conv layout
    # contracts directly against it (absorbs the NCHW flatten + transpose);
    # padded p / c positions are zero rows.
    w3 = proj_w.reshape(enc_out_dim, conv_c, p).transpose(2, 1, 0)  # (P, Cc, D)
    w3 = jnp.pad(w3, ((0, p_pad - p), (0, cc_pad - conv_c),
                      (0, d_pad - enc_out_dim)))
    w3_flat = w3.reshape(p_pad * cc_pad, d_pad)

    w1_k = jnp.pad(w1.T, ((0, d_pad - enc_out_dim), (0, hid_pad - hidden_dim)))
    w2_k = jnp.pad(w2.T, ((0, hid_pad - hidden_dim), (0, d_pad - enc_out_dim)))
    b2_k = jnp.pad(b2, (0, d_pad - enc_out_dim)).reshape(1, d_pad)

    kernel_params = dict(
        wconv=wconv.astype(jnp.bfloat16),
        bconv=bconv,
        w3=w3_flat.astype(jnp.bfloat16),
        w1=w1_k.astype(jnp.bfloat16),
        w2=w2_k.astype(jnp.bfloat16),
        b2=b2_k,
    )
    return dict(kernel=kernel_params, torch=torch_params)


# ----------------------------------------------------------------------------
# Forward pass: im2col (layout only, tiny at these shapes) in the wrapper,
# everything else in one pallas_call.
# ----------------------------------------------------------------------------
def _im2col_nmajor(x, k, stride, oh, ow, p_pad, k_pad):
    """(N,C,H,W) -> (N*P_pad, K_pad); row = n*P_pad + oh*OW + ow,
    col = c*k*k + kh*k + kw (PyTorch conv-weight flatten order)."""
    n, c, _, _ = x.shape
    taps = []
    for kh in range(k):
        for kw in range(k):
            taps.append(x[:, :, kh:kh + stride * oh:stride,
                                kw:kw + stride * ow:stride])        # (N,C,OH,OW)
    pt = jnp.stack(taps, axis=2)                  # (N, C, k*k, OH, OW)
    pt = jnp.transpose(pt, (0, 3, 4, 1, 2))       # (N, OH, OW, C, k*k)
    pt = pt.reshape(n, oh * ow, c * k * k)
    pt = jnp.pad(pt, ((0, 0), (0, p_pad - oh * ow), (0, k_pad - c * k * k)))
    return pt.reshape(n * p_pad, k_pad)


def soda_predictor_forward(params, x):
    kp = params["kernel"]
    n, c, h, w = x.shape
    k, stride = 3, 2
    oh = (h - k) // stride + 1
    ow = (w - k) // stride + 1

    # All pads are recovered from (static) weight shapes so this jits cleanly.
    k_pad, cc_pad = kp["wconv"].shape
    d_pad = kp["b2"].shape[1]
    p_pad = kp["w3"].shape[0] // cc_pad
    out_dim = params["torch"]["b2"].shape[0]

    patches = _im2col_nmajor(x, k, stride, oh, ow, p_pad, k_pad)
    patches = patches.astype(jnp.bfloat16)

    kernel = functools.partial(_fused_kernel, n, p_pad)
    out_pad = pl.pallas_call(
        kernel,
        out_shape=jax.ShapeDtypeStruct((n, d_pad), jnp.float32),
        in_specs=[_VMEM] * 7,
        out_specs=_VMEM,
    )(patches, kp["wconv"], kp["bconv"], kp["w3"],
      kp["w1"], kp["w2"], kp["b2"])
    return out_pad[:, :out_dim]


# ----------------------------------------------------------------------------
# Plain-JAX reference of the PyTorch module (same bf16 operand quantization as
# the kernel, so any residual difference is accumulation-order noise only).
# ----------------------------------------------------------------------------
def reference_forward(params, x):
    tp = params["torch"]
    bf = lambda a: a.astype(jnp.bfloat16).astype(jnp.float32)
    y = jax.lax.conv_general_dilated(
        bf(x), bf(tp["conv_w"]), window_strides=(2, 2), padding="VALID",
        dimension_numbers=("NCHW", "OIHW", "NCHW"),
        preferred_element_type=jnp.float32)
    y = jnp.maximum(y + tp["conv_b"].reshape(1, -1, 1, 1), 0.0)
    flat = y.reshape(x.shape[0], -1)                        # NCHW flatten
    feats = bf(flat) @ bf(tp["proj_w"]).T                   # projection, bias 0
    z = bf(feats) @ bf(tp["w1"]).T                          # b1 == 0
    mean = jnp.mean(z, axis=0, keepdims=True)
    var = jnp.mean((z - mean) ** 2, axis=0, keepdims=True)  # biased var (BN train)
    h = jnp.maximum((z - mean) * jax.lax.rsqrt(var + 1e-5), 0.0)
    return bf(h) @ bf(tp["w2"]).T + tp["b2"].reshape(1, -1)


# ----------------------------------------------------------------------------
if __name__ == "__main__":
    key = jax.random.PRNGKey(0)
    k_x, k_p = jax.random.split(key)

    # Small shapes: batch=2, channels=4, spatial=16x16, conv_c=32, enc_out=64, hidden=32
    N, C, H, W = 2, 4, 16, 16
    CONV_C, ENC_OUT_DIM, HIDDEN_DIM = 32, 64, 32

    x = jax.random.normal(k_x, (N, C, H, W), dtype=jnp.float32)
    params = make_params(k_p, C, H, CONV_C, ENC_OUT_DIM, HIDDEN_DIM)

    fwd = jax.jit(soda_predictor_forward)
    out = jax.block_until_ready(fwd(params, x))

    assert out.shape == (N, ENC_OUT_DIM), out.shape
    assert out.dtype == jnp.float32
    assert bool(jnp.all(jnp.isfinite(out)))

    # Validate the layout folding / fusion against a plain-JAX reference.
    ref = reference_forward(params, x)
    rel_err = float(jnp.max(jnp.abs(out - ref)) / (jnp.max(jnp.abs(ref)) + 1e-8))
    assert rel_err < 1e-2, rel_err

    print("KERNEL_OK")
</pallas_src>

<mosaic_0001>
module attributes {stable_mosaic.version = 11 : i64} {
  func.func @_fused_kernel(%arg0: memref<128x128xbf16, #tpu.memory_space<vmem>>, %arg1: memref<128x128xbf16, #tpu.memory_space<vmem>>, %arg2: memref<1x128xf32, #tpu.memory_space<vmem>>, %arg3: memref<8192x128xbf16, #tpu.memory_space<vmem>>, %arg4: memref<128x128xbf16, #tpu.memory_space<vmem>>, %arg5: memref<128x128xbf16, #tpu.memory_space<vmem>>, %arg6: memref<1x128xf32, #tpu.memory_space<vmem>>, %arg7: memref<2x128xf32, #tpu.memory_space<vmem>>) attributes {dimension_semantics = [], scalar_prefetch = 0 : i64, scratch_operands = 0 : i64, tpu.core_type = #tpu.core_type<tc>} {
    %c0 = arith.constant 0 : index
    %c0_0 = arith.constant 0 : index
    %0 = vector.load %arg0[%c0, %c0_0] : memref<128x128xbf16, #tpu.memory_space<vmem>>, vector<128x128xbf16>
    %c0_1 = arith.constant 0 : index
    %c0_2 = arith.constant 0 : index
    %1 = vector.load %arg1[%c0_1, %c0_2] : memref<128x128xbf16, #tpu.memory_space<vmem>>, vector<128x128xbf16>
    %cst = arith.constant dense<0.000000e+00> : vector<128x128xf32>
    %2 = tpu.matmul %0, %1, %cst {dimension_numbers = #tpu.dot_dimension_numbers<[1], [0], [0], [1], [0, 0, 1, 1], [], []>} : vector<128x128xbf16>, vector<128x128xbf16>, vector<128x128xf32> -> vector<128x128xf32>
    %c0_3 = arith.constant 0 : index
    %c0_4 = arith.constant 0 : index
    %3 = vector.load %arg2[%c0_3, %c0_4] : memref<1x128xf32, #tpu.memory_space<vmem>>, vector<1x128xf32>
    %4 = vector.broadcast %3 : vector<1x128xf32> to vector<128x128xf32>
    %5 = arith.addf %2, %4 : vector<128x128xf32>
    %cst_5 = arith.constant 0.000000e+00 : f32
    %6 = vector.broadcast %cst_5 : f32 to vector<128x128xf32>
    %7 = arith.maximumf %5, %6 : vector<128x128xf32>
    %8 = arith.truncf %7 : vector<128x128xf32> to vector<128x128xbf16>
    %9 = vector.shape_cast %8 : vector<128x128xbf16> to vector<2x8192xbf16>
    %c0_6 = arith.constant 0 : index
    %c0_7 = arith.constant 0 : index
    %10 = vector.load %arg3[%c0_6, %c0_7] : memref<8192x128xbf16, #tpu.memory_space<vmem>>, vector<8192x128xbf16>
    %cst_8 = arith.constant dense<0.000000e+00> : vector<2x128xf32>
    %11 = tpu.matmul %9, %10, %cst_8 {dimension_numbers = #tpu.dot_dimension_numbers<[1], [0], [0], [1], [0, 0, 1, 1], [], []>} : vector<2x8192xbf16>, vector<8192x128xbf16>, vector<2x128xf32> -> vector<2x128xf32>
    %12 = arith.truncf %11 : vector<2x128xf32> to vector<2x128xbf16>
    %c0_9 = arith.constant 0 : index
    %c0_10 = arith.constant 0 : index
    %13 = vector.load %arg4[%c0_9, %c0_10] : memref<128x128xbf16, #tpu.memory_space<vmem>>, vector<128x128xbf16>
    %cst_11 = arith.constant dense<0.000000e+00> : vector<2x128xf32>
    %14 = tpu.matmul %12, %13, %cst_11 {dimension_numbers = #tpu.dot_dimension_numbers<[1], [0], [0], [1], [0, 0, 1, 1], [], []>} : vector<2x128xbf16>, vector<128x128xbf16>, vector<2x128xf32> -> vector<2x128xf32>
    %cst_12 = arith.constant dense<0.000000e+00> : vector<128xf32>
    %15 = vector.multi_reduction <add>, %14, %cst_12 [0] : vector<2x128xf32> to vector<128xf32>
    %16 = vector.shape_cast %15 : vector<128xf32> to vector<1x128xf32>
    %cst_13 = arith.constant 2.000000e+00 : f32
    %17 = vector.broadcast %cst_13 : f32 to vector<1x128xf32>
    %18 = arith.divf %16, %17 : vector<1x128xf32>
    %19 = vector.broadcast %18 : vector<1x128xf32> to vector<2x128xf32>
    %20 = arith.subf %14, %19 : vector<2x128xf32>
    %21 = arith.mulf %20, %20 : vector<2x128xf32>
    %cst_14 = arith.constant dense<0.000000e+00> : vector<128xf32>
    %22 = vector.multi_reduction <add>, %21, %cst_14 [0] : vector<2x128xf32> to vector<128xf32>
    %23 = vector.shape_cast %22 : vector<128xf32> to vector<1x128xf32>
    %cst_15 = arith.constant 2.000000e+00 : f32
    %24 = vector.broadcast %cst_15 : f32 to vector<1x128xf32>
    %25 = arith.divf %23, %24 : vector<1x128xf32>
    %26 = vector.broadcast %18 : vector<1x128xf32> to vector<2x128xf32>
    %27 = arith.subf %14, %26 : vector<2x128xf32>
    %cst_16 = arith.constant 9.99999974E-6 : f32
    %28 = vector.broadcast %cst_16 : f32 to vector<1x128xf32>
    %29 = arith.addf %25, %28 : vector<1x128xf32>
    %30 = math.rsqrt %29 : vector<1x128xf32>
    %31 = vector.broadcast %30 : vector<1x128xf32> to vector<2x128xf32>
    %32 = arith.mulf %27, %31 : vector<2x128xf32>
    %cst_17 = arith.constant 0.000000e+00 : f32
    %33 = vector.broadcast %cst_17 : f32 to vector<2x128xf32>
    %34 = arith.maximumf %32, %33 : vector<2x128xf32>
    %35 = arith.truncf %34 : vector<2x128xf32> to vector<2x128xbf16>
    %c0_18 = arith.constant 0 : index
    %c0_19 = arith.constant 0 : index
    %36 = vector.load %arg5[%c0_18, %c0_19] : memref<128x128xbf16, #tpu.memory_space<vmem>>, vector<128x128xbf16>
    %cst_20 = arith.constant dense<0.000000e+00> : vector<2x128xf32>
    %37 = tpu.matmul %35, %36, %cst_20 {dimension_numbers = #tpu.dot_dimension_numbers<[1], [0], [0], [1], [0, 0, 1, 1], [], []>} : vector<2x128xbf16>, vector<128x128xbf16>, vector<2x128xf32> -> vector<2x128xf32>
    %c0_21 = arith.constant 0 : index
    %c0_22 = arith.constant 0 : index
    %38 = vector.load %arg6[%c0_21, %c0_22] : memref<1x128xf32, #tpu.memory_space<vmem>>, vector<1x128xf32>
    %39 = vector.broadcast %38 : vector<1x128xf32> to vector<2x128xf32>
    %40 = arith.addf %37, %39 : vector<2x128xf32>
    %c0_23 = arith.constant 0 : index
    %c0_24 = arith.constant 0 : index
    %41 = vector.load %arg7[%c0_23, %c0_24] : memref<2x128xf32, #tpu.memory_space<vmem>>, vector<2x128xf32>
    tpu.vector_store %arg7[%c0_23, %c0_24], %40 {strides = array<i32>} : memref<2x128xf32, #tpu.memory_space<vmem>>, vector<2x128xf32>,
    return
  }
}

</mosaic_0001>

<bundles_post_ra>
// kernel: soda_predictor_forward.1
= control target key start
LH: loop header
LB: loop body
LE: loop exit
PB: predicated region body
PF: predicated region fallthrough
CT: control target
= control target key end

     0   :  { %12 = vsyncpa [#allocation3], 0  ;;  %s9056_s0 = inlined_call_operand.vmem [shape: bf16[128,128], index: 0, kind: input, shape index: {}]   ;;  %s9057_s1 = inlined_call_operand.hbm [shape: bf16[128,128], index: 1, kind: input, shape index: {}]   ;;  %s9058_s2 = inlined_call_operand.hbm [shape: f32[1,128], index: 2, kind: input, shape index: {}]   ;;  %s9059_s3 = inlined_call_operand.hbm [shape: bf16[8192,128], index: 3, kind: input, shape index: {}]   ;;  %s9060_s4 = inlined_call_operand.hbm [shape: bf16[128,128], index: 4, kind: input, shape index: {}]   ;;  %s9061_s5 = inlined_call_operand.hbm [shape: bf16[128,128], index: 5, kind: input, shape index: {}]   ;;  %s9062_s6 = inlined_call_operand.hbm [shape: f32[1,128], index: 6, kind: input, shape index: {}]   ;;  %s9063_s7 = inlined_call_operand.hbm [shape: f32[2,128], index: 7, kind: output, shape index: {}]  }
   0x1   :  { %13 = vsyncpa [#allocation6], 0 }
   0x2   :  { %14 = vsyncpa [#allocation9], 0 }
   0x3   :  { %15 = vsyncpa [#allocation12], 0 }
   0x4   :  { %16 = vsyncpa [#allocation4], 0  ;;  %s8572_s24 = smov [#allocation5]   ;;  %s8408_s28 = scalar_lea.hbm %s9058_s2, 16 }
   0x5   :  { %s37_s25 = sshll.u32 %s8572_s24, 4  ;;  %p8409_p0 = scmp.ne.s32.totalorder %s9058_s2, %s8408_s28  ;;  %s38_s25 = int_to_ptr.vmem [resolvable:$true] %s37_s25 }
   0x6   :  { %p8412_p1 = scmp.lt.u32.totalorder %s8408_s28, %s9058_s2 }
   0x8   :  { %p8414_p2 = pnand %p8412_p1, %p8409_p0 }
   0xa   :  { %8417 = shalt.err (!%p8414_p2)
}
   0xb   :  { %s8418_s10 = scalar_lea.vmem %s38_s25, 16  ;;  %s8422_s11 = scalar_lea.vmem %s38_s25, 32 }
   0xc   :  { %p8419_p3 = scmp.ne.s32.totalorder %s38_s25, %s8418_s10  ;;  %p8423_p4 = scmp.lt.s32.totalorder %s38_s25, %s38_s25 }
   0xd   :  { %p8424_p5 = scmp.lt.s32.totalorder %s8422_s11, %s8418_s10 }
   0xf   :  { %p8425_p6 = por %p8424_p5, %p8423_p4 }
  0x11   :  { %p8426_p7 = pnand %p8425_p6, %p8419_p3 }
  0x13   :  { %8429 = shalt.err (!%p8426_p7)
}
  0x14   :  { %40 = dma.hbm_to_vmem [thread:$0]  %s9058_s2, 16, %s38_s25, [#allocation6]  }
  0x15   :  { %s8573_s14 = smov [#allocation8]   ;;  %s8574_s16 = smov [#allocation2]  }
  0x16   :  { %s58_s15 = sshll.u32 %s8573_s14, 4  ;;  %s24_s17 = sshll.u32 %s8574_s16, 4  ;;  %s59_s15 = int_to_ptr.vmem [resolvable:$true] %s58_s15  ;;  %s25_s17 = int_to_ptr.vmem [resolvable:$true] %s24_s17 }
  0x17   :  { %s8430_s20 = scalar_lea.hbm %s9060_s4, 1024 }
  0x18   :  { %p8431_p8 = scmp.ne.s32.totalorder %s9060_s4, %s8430_s20  ;;  %p8434_p9 = scmp.lt.u32.totalorder %s8430_s20, %s9060_s4 }
  0x1a   :  { %p8436_p10 = pnand %p8434_p9, %p8431_p8 }
  0x1c   :  { %8439 = shalt.err (!%p8436_p10)
}
  0x1d   :  { %s8440_s2 = scalar_lea.vmem %s59_s15, 1024  ;;  %p8445_p12 = scmp.lt.s32.totalorder %s59_s15, %s59_s15 }
  0x1e   :  { %p8441_p11 = scmp.ne.s32.totalorder %s59_s15, %s8440_s2  ;;  %p8446_p13 = scmp.lt.s32.totalorder %s8440_s2, %s8440_s2 }
  0x20   :  { %p8447_p0 = por %p8446_p13, %p8445_p12 }
  0x22   :  { %p8448_p1 = pnand %p8447_p0, %p8441_p11 }
  0x24   :  { %8451 = shalt.err (!%p8448_p1)
}
  0x25   :  { %s8575_s25 = smov 64   ;;  %s8576_s26 = smov 4  }
  0x26   :  { %64 = dma.hbm_to_vmem [thread:$0]  %s9060_s4, 1024, %s59_s15, [#allocation9], %s8575_s25, %s8575_s25, %s8576_s26  }
  0x27   :  { %s8452_s8 = scalar_lea.hbm %s9057_s1, 1024 }
  0x28   :  { %p8453_p2 = scmp.ne.s32.totalorder %s9057_s1, %s8452_s8  ;;  %p8456_p3 = scmp.lt.u32.totalorder %s8452_s8, %s9057_s1 }
  0x2a   :  { %p8458_p4 = pnand %p8456_p3, %p8453_p2 }
  0x2c   :  { %8461 = shalt.err (!%p8458_p4)
}
  0x2d   :  { %s8462_s13 = scalar_lea.vmem %s25_s17, 1024  ;;  %p8467_p6 = scmp.lt.s32.totalorder %s25_s17, %s25_s17 }
  0x2e   :  { %p8463_p5 = scmp.ne.s32.totalorder %s25_s17, %s8462_s13  ;;  %p8468_p7 = scmp.lt.s32.totalorder %s8462_s13, %s8462_s13 }
  0x30   :  { %p8469_p8 = por %p8468_p7, %p8467_p6 }
  0x32   :  { %p8470_p9 = pnand %p8469_p8, %p8463_p5 }
  0x34   :  { %8473 = shalt.err (!%p8470_p9)
}
  0x35   :  { %30 = dma.hbm_to_vmem [thread:$0]  %s9057_s1, 1024, %s25_s17, [#allocation3], %s8575_s25, %s8575_s25, %s8576_s26  }
  0x36   :  { %s8577_s15 = smov [#allocation7]   ;;  %s8578_s18 = smov [#allocation10]  }
  0x37   :  { %s46_s16 = sshll.u32 %s8577_s15, 4  ;;  %s70_s19 = sshll.u32 %s8578_s18, 4  ;;  %s47_s16 = int_to_ptr.vmem [resolvable:$true] %s46_s16  ;;  %s71_s19 = int_to_ptr.vmem [resolvable:$true] %s70_s19 }
  0x38   :  { %s8474_s22 = scalar_lea.hbm %s9059_s3, 65536 }
  0x39   :  { %p8475_p10 = scmp.ne.s32.totalorder %s9059_s3, %s8474_s22  ;;  %p8478_p11 = scmp.lt.u32.totalorder %s8474_s22, %s9059_s3 }
  0x3b   :  { %p8480_p12 = pnand %p8478_p11, %p8475_p10 }
  0x3d   :  { %8483 = shalt.err (!%p8480_p12)
}
  0x3e   :  { %s8484_s1 = scalar_lea.vmem %s47_s16, 65536  ;;  %p8489_p0 = scmp.lt.s32.totalorder %s47_s16, %s47_s16 }
  0x3f   :  { %p8485_p13 = scmp.ne.s32.totalorder %s47_s16, %s8484_s1  ;;  %p8490_p1 = scmp.lt.s32.totalorder %s8484_s1, %s8484_s1 }
  0x41   :  { %p8491_p2 = por %p8490_p1, %p8489_p0 }
  0x43   :  { %p8492_p3 = pnand %p8491_p2, %p8485_p13 }
  0x45   :  { %8495 = shalt.err (!%p8492_p3)
}
  0x46   :  { %52 = dma.hbm_to_vmem [thread:$0]  %s9059_s3, 65536, %s47_s16, [#allocation6], %s8575_s25, %s8575_s25, %s8576_s26  }
  0x47   :  { %s8496_s8 = scalar_lea.hbm %s9061_s5, 1024 }
  0x48   :  { %p8497_p4 = scmp.ne.s32.totalorder %s9061_s5, %s8496_s8  ;;  %p8500_p5 = scmp.lt.u32.totalorder %s8496_s8, %s9061_s5 }
  0x4a   :  { %p8502_p6 = pnand %p8500_p5, %p8497_p4 }
  0x4c   :  { %8505 = shalt.err (!%p8502_p6)
}
  0x4d   :  { %s8506_s13 = scalar_lea.vmem %s71_s19, 1024  ;;  %p8511_p8 = scmp.lt.s32.totalorder %s71_s19, %s71_s19 }
  0x4e   :  { %p8507_p7 = scmp.ne.s32.totalorder %s71_s19, %s8506_s13  ;;  %p8512_p9 = scmp.lt.s32.totalorder %s8506_s13, %s8506_s13 }
  0x50   :  { %p8513_p10 = por %p8512_p9, %p8511_p8 }
  0x52   :  { %p8514_p11 = pnand %p8513_p10, %p8507_p7 }
  0x54   :  { %8517 = shalt.err (!%p8514_p11)
}
  0x55   :  { %76 = dma.hbm_to_vmem [thread:$0]  %s9061_s5, 1024, %s71_s19, [#allocation9], %s8575_s25, %s8575_s25, %s8576_s26  }
  0x56   :  { %s8579_s14 = smov [#allocation11]   ;;  %s8518_s20 = scalar_lea.hbm %s9062_s6, 16 }
  0x57   :  { %s83_s15 = sshll.u32 %s8579_s14, 4  ;;  %p8519_p12 = scmp.ne.s32.totalorder %s9062_s6, %s8518_s20  ;;  %s84_s15 = int_to_ptr.vmem [resolvable:$true] %s83_s15 }
  0x58   :  { %p8522_p13 = scmp.lt.u32.totalorder %s8518_s20, %s9062_s6 }
  0x5a   :  { %p8524_p0 = pnand %p8522_p13, %p8519_p12 }
  0x5c   :  { %8527 = shalt.err (!%p8524_p0)
}
  0x5d   :  { %s8528_s2 = scalar_lea.vmem %s84_s15, 16  ;;  %s8532_s5 = scalar_lea.vmem %s84_s15, 32 }
  0x5e   :  { %p8529_p1 = scmp.ne.s32.totalorder %s84_s15, %s8528_s2  ;;  %p8533_p2 = scmp.lt.s32.totalorder %s84_s15, %s84_s15 }
  0x5f   :  { %p8534_p3 = scmp.lt.s32.totalorder %s8532_s5, %s8528_s2 }
  0x61   :  { %p8535_p4 = por %p8534_p3, %p8533_p2 }
  0x63   :  { %p8536_p5 = pnand %p8535_p4, %p8529_p1 }
  0x65   :  { %8539 = shalt.err (!%p8536_p5)
}
  0x66   :  { %86 = dma.hbm_to_vmem [thread:$0]  %s9062_s6, 16, %s84_s15, [#allocation12]  }
  0x67   :  { %8562 = dma.done.wait [#allocation3], 1024  }
  0x68   :  { %8563 = vsyncadd [#allocation3], 4294966272 }
  0x69   :  { %8564 = dma.done.wait [#allocation6], 65552  }
  0x6a   :  { %8565 = vsyncadd [#allocation6], 4294901744 }
  0x6b   :  { %8566 = dma.done.wait [#allocation9], 2048  }
  0x6c   :  { %8567 = vsyncadd [#allocation9], 4294965248 }
  0x6d   :  { %8568 = dma.done.wait [#allocation12], 16  }
  0x6e   :  { %8569 = vsyncadd [#allocation12], 4294967280  ;;  %v7862_v0 = vld [vmem:[#allocation2] sm:$0xff]   ;;  %v7863_v1 = vld [vmem:[#allocation2 + $0x8] sm:$0xff]   ;;  %v1422_v62 = vlaneseq  ;;  %vm8582_vm0 = vmmov 0   ;;  %vm6331_vm1 = vcmask 1041408  }
  0x6f   :  { %7778 = vmatprep.subr.bf16.mxu0 %v7862_v0  ;;  %v7864_v2 = vld [vmem:[#allocation2 + $0x10] sm:$0xff]   ;;  %v7865_v3 = vld [vmem:[#allocation2 + $0x18] sm:$0xff]   ;;  %v7870_v4 = vld [vmem:[%s9056_s0] sm:$0xff]  }
  0x70   :  { %7779 = vmatpush3.bf16.msra.mxu0 %v7862_v0  ;;  %7794 = vmatprep.mubr.bf16.mxu0 %v7870_v4  ;;  %v7866_v5 = vld [vmem:[#allocation2 + $0x20] sm:$0xff]   ;;  %v7867_v6 = vld [vmem:[#allocation2 + $0x28] sm:$0xff]   ;;  %v7868_v9 = vld [vmem:[#allocation2 + $0x30] sm:$0xff]   ;;  %v1423_v4 = vshrl.u32 %v1422_v62, 7 }
  0x71   :  { %7780 = vmatprep.subr.bf16.mxu0 %v7863_v1  ;;  %v7878_v7 = vld [vmem:[#allocation7 + $0x40] sm:$0xff]   ;;  %v7869_v10 = vld [vmem:[#allocation2 + $0x38] sm:$0xff]   ;;  %v7872_v12 = vld [vmem:[%s9056_s0 + $0x10] sm:$0xff]  }
  0x72   :  { %v7879_v8 = vld [vmem:[#allocation7] sm:$0xff]   ;;  %7056 = vmatprep.subr.bf16.mxu1 %v7878_v7  ;;  %v7873_v13 = vld [vmem:[%s9056_s0 + $0x18] sm:$0xff]   ;;  %v7876_v16 = vld [vmem:[%s9056_s0 + $0x30] sm:$0xff]  }
  0x73   :  { %7057 = vmatpush3.bf16.msra.mxu1 %v7879_v8  ;;  %v7871_v11 = vld [vmem:[%s9056_s0 + $0x8] sm:$0xff]   ;;  %v7874_v14 = vld [vmem:[%s9056_s0 + $0x20] sm:$0xff]   ;;  %v7877_v17 = vld [vmem:[%s9056_s0 + $0x38] sm:$0xff]  }
  0x74   :  { %7781 = vmatpush3.bf16.msra.mxu0 %v7863_v1  ;;  %v7875_v15 = vld [vmem:[%s9056_s0 + $0x28] sm:$0xff]   ;;  %v7886_v24 = vld [vmem:[#allocation7 + $0x50] sm:$0xff]   ;;  %v7890_v28 = vld [vmem:[#allocation7 + $0x58] sm:$0xff]   ;;  %v8580_v1 = vmov 1966171168   ;;  %s8583_s0 = smov [#allocation13]  }
  0x75   :  { %7782 = vmatprep.subr.bf16.mxu0 %v7864_v2  ;;  %v7880_v18 = vld [vmem:[#allocation7 + $0xc0] sm:$0xff]   ;;  %v7882_v20 = vld [vmem:[#allocation7 + $0x48] sm:$0xff]   ;;  %v7887_v25 = vld [vmem:[#allocation7 + $0x10] sm:$0xff]   ;;  %s6474_s14 = sshll.u32 %s8583_s0, 4  ;;  %s6475_s14 = int_to_ptr.vmem [resolvable:$true] %s6474_s14 }
  0x76   :  { %v7881_v19 = vld [vmem:[#allocation7 + $0x80] sm:$0xff]   ;;  %v7883_v21 = vld [vmem:[#allocation7 + $0x8] sm:$0xff]   ;;  %7058 = vmatprep.subr.bf16.mxu1 %v7882_v20  ;;  %v7888_v26 = vld [vmem:[#allocation7 + $0xd0] sm:$0xff]   ;;  %s8540_s15 = scalar_lea.vmem %s6475_s14, 32  ;;  %p8545_p7 = scmp.lt.s32.totalorder %s6475_s14, %s6475_s14 }
  0x77   :  { %v7884_v22 = vld [vmem:[#allocation7 + $0xc8] sm:$0xff]   ;;  %7059 = vmatpush3.bf16.msra.mxu1 %v7883_v21  ;;  %v7889_v27 = vld [vmem:[#allocation7 + $0x90] sm:$0xff]   ;;  %v7891_v29 = vld [vmem:[#allocation7 + $0x18] sm:$0xff]   ;;  %p8541_p6 = scmp.ne.s32.totalorder %s6475_s14, %s8540_s15  ;;  %p8546_p8 = scmp.lt.s32.totalorder %s8540_s15, %s8540_s15 }
  0x78   :  { %7783 = vmatpush3.bf16.msra.mxu0 %v7864_v2  ;;  %v7885_v23 = vld [vmem:[#allocation7 + $0x88] sm:$0xff]   ;;  %7060 = vmatprep.subr.bf16.mxu1 %v7886_v24  ;;  %v7892_v30 = vld [vmem:[#allocation7 + $0xd8] sm:$0xff]   ;;  %v7894_v32 = vld [vmem:[#allocation7 + $0x60] sm:$0xff]   ;;  %v1420_v2 = vunpack.c.l.s4 %v8580_v1 }
  0x79   :  { %7784 = vmatprep.subr.bf16.mxu0 %v7865_v3  ;;  %v7893_v31 = vld [vmem:[#allocation7 + $0x98] sm:$0xff]   ;;  %v7895_v33 = vld [vmem:[#allocation7 + $0x20] sm:$0xff]   ;;  %v7898_v36 = vld [vmem:[#allocation7 + $0x68] sm:$0xff]   ;;  %p8547_p9 = por %p8546_p8, %p8545_p7 }
  0x7a   :  { %v7896_v34 = vld [vmem:[#allocation7 + $0xe0] sm:$0xff]   ;;  %v7899_v37 = vld [vmem:[#allocation7 + $0x28] sm:$0xff]   ;;  %v7902_v40 = vld [vmem:[#allocation7 + $0x70] sm:$0xff]  }
  0x7b   :  { %7061 = vmatpush3.bf16.msra.mxu1 %v7887_v25  ;;  %v7897_v35 = vld [vmem:[#allocation7 + $0xa0] sm:$0xff]   ;;  %v7900_v38 = vld [vmem:[#allocation7 + $0xe8] sm:$0xff]   ;;  %v7903_v41 = vld [vmem:[#allocation7 + $0x30] sm:$0xff]   ;;  %p8548_p10 = pnand %p8547_p9, %p8541_p6 }
  0x7c   :  { %7785 = vmatpush3.bf16.msra.mxu0 %v7865_v3  ;;  %7062 = vmatprep.subr.bf16.mxu1 %v7890_v28  ;;  %v7901_v39 = vld [vmem:[#allocation7 + $0xa8] sm:$0xff]   ;;  %v7904_v42 = vld [vmem:[#allocation7 + $0xf0] sm:$0xff]   ;;  %v7906_v44 = vld [vmem:[#allocation7 + $0x78] sm:$0xff]  }
  0x7d   :  { %7786 = vmatprep.subr.bf16.mxu0 %v7866_v5  ;;  %v7905_v43 = vld [vmem:[#allocation7 + $0xb0] sm:$0xff]   ;;  %v7907_v45 = vld [vmem:[#allocation7 + $0x38] sm:$0xff]   ;;  %v7910_v48 = vld [vmem:[#allocation7 + $0x140] sm:$0xff]  }
  0x7e   :  { %v7908_v46 = vld [vmem:[#allocation7 + $0xf8] sm:$0xff]   ;;  %v7912_v49 = vld [vmem:[#allocation7 + $0x1c0] sm:$0xff]  }
  0x7f   :  { %7063 = vmatpush3.bf16.msra.mxu1 %v7891_v29  ;;  %v7909_v47 = vld [vmem:[#allocation7 + $0xb8] sm:$0xff]  }
  0x80   :  { %7787 = vmatpush3.bf16.msra.mxu0 %v7866_v5  ;;  %7064 = vmatprep.subr.bf16.mxu1 %v7894_v32  ;;  %v8732_v50 = vld [vmem:[#allocation5] ss:$0 sm:$0xff]  ;;  %v1421_v5 = vunpack.c.0.s8 %v1420_v2 }
  0x81   :  { %7788 = vmatprep.subr.bf16.mxu0 %v7867_v6 }
  0x83   :  { %7065 = vmatpush3.bf16.msra.mxu1 %v7895_v33 }
  0x84   :  { %7789 = vmatpush3.bf16.msra.mxu0 %v7867_v6  ;;  %7066 = vmatprep.subr.bf16.mxu1 %v7898_v36 }
  0x85   :  { %7790 = vmatprep.subr.bf16.mxu0 %v7868_v9 }
  0x87   :  { %7067 = vmatpush3.bf16.msra.mxu1 %v7899_v37 }
  0x88   :  { %7791 = vmatpush3.bf16.msra.mxu0 %v7868_v9  ;;  %7068 = vmatprep.subr.bf16.mxu1 %v7902_v40 }
  0x89   :  { %7792 = vmatprep.subr.bf16.mxu0 %v7869_v10 }
  0x8b   :  { %7069 = vmatpush3.bf16.msra.mxu1 %v7903_v41 }
  0x8c   :  { %7793 = vmatpush3.bf16.msra.mxu0 %v7869_v10  ;;  %7070 = vmatprep.subr.bf16.mxu1 %v7906_v44 }
  0x8d   :  { %7078 = vmatprep.subr.bf16.mxu0 %v7880_v18 }
  0x8f   :  { %7795 = vmatmul.mubr.bf16.vlgmr.msra.gmra.mrb[0].mxu0 %v7871_v11  ;;  %7071 = vmatpush3.bf16.msra.mxu1 %v7907_v45 }
  0x90   :  { %7798 = vmatprep.mubr.bf16.mxu0 %v7872_v12  ;;  %7079 = vmatpush3.bf16.msra.mxu0 %v7881_v19 }
  0x91   :  { %7080 = vmatprep.subr.bf16.mxu0 %v7884_v22  ;;  %7100 = vmatprep.subr.bf16.mxu1 %v7910_v48 }
  0x94   :  { %7081 = vmatpush3.bf16.msra.mxu0 %v7885_v23 }
  0x95   :  { %7082 = vmatprep.subr.bf16.mxu0 %v7888_v26 }
  0x97   :  { %7799 = vmatmul.mubr.bf16.gmra.mrb[4].mxu0 %v7873_v13 }
  0x98   :  { %7802 = vmatprep.mubr.bf16.mxu0 %v7874_v14  ;;  %7083 = vmatpush3.bf16.msra.mxu0 %v7889_v27 }
  0x99   :  { %7084 = vmatprep.subr.bf16.mxu0 %v7892_v30 }
  0x9c   :  { %7085 = vmatpush3.bf16.msra.mxu0 %v7893_v31 }
  0x9d   :  { %7086 = vmatprep.subr.bf16.mxu0 %v7896_v34 }
  0x9f   :  { %7803 = vmatmul.mubr.bf16.gmra.mrb[8].mxu0 %v7875_v15  ;;  %v8752_v15 = vsub.s32 %v1421_v5, %v1423_v4 }
  0xa0   :  { %7806 = vmatprep.mubr.bf16.mxu0 %v7876_v16  ;;  %7087 = vmatpush3.bf16.msra.mxu0 %v7897_v35 }
  0xa1   :  { %7088 = vmatprep.subr.bf16.mxu0 %v7900_v38 }
  0xa4   :  { %7089 = vmatpush3.bf16.msra.mxu0 %v7901_v39 }
  0xa5   :  { %7090 = vmatprep.subr.bf16.mxu0 %v7904_v42 }
  0xa7   :  { %7807 = vmatmul.mubr.bf16.gmra.mrb[12].mxu0 %v7877_v17 }
  0xa8   :  { %7091 = vmatpush3.bf16.msra.mxu0 %v7905_v43 }
  0xa9   :  { %7092 = vmatprep.subr.bf16.mxu0 %v7908_v46 }
  0xac   :  { %7093 = vmatpush3.bf16.msra.mxu0 %v7909_v47 }
  0xad   :  { %7122 = vmatprep.subr.bf16.mxu0 %v7912_v49 }
 0x162   :  { %v7796_v51 = vpop.f32.mrb[0].mxu0 }
 0x163   :  { %v284_v52 = vadd.f32 %v7796_v51, %v8732_v50  ;;  %v275_v53 = vpop.f32.mrb[1].mxu0 }
 0x164   :  { %v7797_v54 = vpop.f32.mrb[2].mxu0  ;;  %v276_v6 = vadd.f32 %v8732_v50, %v275_v53 }
 0x165   :  { %v287_v55 = vadd.f32 %v7797_v54, %v8732_v50  ;;  %v278_v56 = vpop.f32.mrb[3].mxu0  ;;  %v340_v11 = vmax.f32 %v284_v52, 0.0 }
 0x166   :  { %v279_v8 = vadd.f32 %v8732_v50, %v278_v56  ;;  %v338_v18 = vmax.f32 %v276_v6, 0.0 }
 0x167   :  { %v341_v19 = vmax.f32 %v287_v55, 0.0 }
 0x168   :  { %v339_v22 = vmax.f32 %v279_v8, 0.0 }
 0x16a   :  { %v7800_v57 = vpop.f32.mrb[4].mxu0 }
 0x16b   :  { %v8737_v58 = vadd.f32 %v7800_v57, %v8732_v50  ;;  %v291_v59 = vpop.f32.mrb[5].mxu0 }
 0x16c   :  { %v8740_v60 = vadd.f32 %v8732_v50, %v291_v59  ;;  %v7801_v61 = vpop.f32.mrb[6].mxu0 }
 0x16d   :  { %v8743_v63 = vadd.f32 %v7801_v61, %v8732_v50  ;;  %v294_v0 = vpop.f32.mrb[7].mxu0  ;;  %v344_v25 = vmax.f32 %v8737_v58, 0.0 }
 0x16e   :  { %v8746_v3 = vadd.f32 %v8732_v50, %v294_v0  ;;  %v342_v31 = vmax.f32 %v8740_v60, 0.0  ;;  %v7911_v60 = vld [vmem:[#allocation7 + $0x100] sm:$0xff]  }
 0x16f   :  { %v345_v56 = vmax.f32 %v8743_v63, 0.0 }
 0x170   :  { %v343_v61 = vmax.f32 %v8746_v3, 0.0 }
 0x172   :  { %v7804_v7 = vpop.f32.mrb[8].mxu0 }
 0x173   :  { %v316_v9 = vadd.f32 %v7804_v7, %v8732_v50  ;;  %v307_v10 = vpop.f32.mrb[9].mxu0 }
 0x174   :  { %v308_v12 = vadd.f32 %v8732_v50, %v307_v10  ;;  %v7805_v13 = vpop.f32.mrb[10].mxu0 }
 0x175   :  { %v348_v14 = vmax.f32 %v316_v9, 0.0  ;;  %v319_v16 = vadd.f32 %v7805_v13, %v8732_v50  ;;  %v310_v17 = vpop.f32.mrb[11].mxu0  ;;  %v7914_v9 = vld [vmem:[#allocation7 + $0x148] sm:$0xff]  }
 0x176   :  { %v346_v20 = vmax.f32 %v308_v12, 0.0  ;;  %v311_v21 = vadd.f32 %v8732_v50, %v310_v17  ;;  %v7915_v13 = vld [vmem:[#allocation7 + $0x108] sm:$0xff]  }
 0x177   :  { %v6505_v23 = vpack.i.bf16 %v348_v14, %v340_v11  ;;  %v349_v24 = vmax.f32 %v319_v16, 0.0 }
 0x178   :  { %v6503_v26 = vpack.i.bf16 %v346_v20, %v338_v18  ;;  %v347_v27 = vmax.f32 %v311_v21, 0.0 }
 0x179   :  { %v1516_v28 = vcombine.high %v6505_v23, %v6505_v23  ;;  %v8758_v29 = vrot.slane %v6505_v23, %v8752_v15  ;;  %v6506_v30 = vpack.i.bf16 %v349_v24, %v341_v19  ;;  %v7913_v19 = vld [vmem:[#allocation7 + $0x180] sm:$0xff]  }
 0x17a   :  { %v1418_v32 = vcombine.high %v6503_v26, %v6503_v26  ;;  %v1425_v33 = vrot.slane %v6503_v26, %v8752_v15  ;;  %v6504_v34 = vpack.i.bf16 %v347_v27, %v339_v22  ;;  %v7808_v35 = vpop.f32.mrb[12].mxu0  ;;  %v7916_v27 = vld [vmem:[#allocation7 + $0x1c8] sm:$0xff]  }
 0x17b   :  { %v8763_v36 = vrot.slane %v1516_v28, %v8752_v15  ;;  %v8767_v37 = vrot.slane %v8758_v29, %v8752_v15  ;;  %v1565_v38 = vcombine.high %v6506_v30, %v6506_v30  ;;  %v8770_v39 = vrot.slane %v6506_v30, %v8752_v15  ;;  %v323_v40 = vpop.f32.mrb[13].mxu0  ;;  %v7918_v28 = vld [vmem:[#allocation7 + $0x150] sm:$0xff]  }
 0x17c   :  { %v8773_v41 = vrot.slane %v1418_v32, %v8752_v15  ;;  %v1467_v42 = vcombine.high %v6504_v34, %v6504_v34  ;;  %v8776_v43 = vrot.slane %v6504_v34, %v8752_v15  ;;  %v332_v44 = vadd.f32 %v7808_v35, %v8732_v50  ;;  %v7809_v45 = vpop.f32.mrb[14].mxu0 }
 0x17d   :  { %v8780_v46 = vrot.slane %v1565_v38, %v8752_v15  ;;  %v8784_v47 = vrot.slane %v8770_v39, %v8752_v15  ;;  %v324_v48 = vadd.f32 %v8732_v50, %v323_v40  ;;  %v335_v49 = vadd.f32 %v7809_v45, %v8732_v50  ;;  %v326_v51 = vpop.f32.mrb[15].mxu0  ;;  %v7919_v38 = vld [vmem:[#allocation7 + $0x110] sm:$0xff]   ;;  %v7922_v45 = vld [vmem:[#allocation7 + $0x158] sm:$0xff]  }
 0x17e   :  { %v1481_v52 = vrot.slane %v1467_v42, %v8752_v15  ;;  %v8791_v53 = vrot.slane %v8776_v43, %v8752_v15  ;;  %v352_v54 = vmax.f32 %v332_v44, 0.0  ;;  %v327_v55 = vadd.f32 %v8732_v50, %v326_v51  ;;  %v7917_v42 = vld [vmem:[#allocation7 + $0x188] sm:$0xff]   ;;  %v7920_v44 = vld [vmem:[#allocation7 + $0x1d0] sm:$0xff]  }
 0x17f   :  { %v350_v57 = vmax.f32 %v324_v48, 0.0  ;;  %v353_v58 = vmax.f32 %v335_v49, 0.0  ;;  %v1433_v59 = vcombine.high %v1425_v33, %v1425_v33  ;;  %v1434_v1 = vcombine.high %v8773_v41, %v8773_v41 }
 0x180   :  { %v6509_v62 = vpack.i.bf16 %v352_v54, %v344_v25  ;;  %v351_v0 = vmax.f32 %v327_v55, 0.0  ;;  %v1441_v6 = vrot.slane %v1425_v33, %v8752_v15  ;;  %v1483_v32 = vcombine.high %v1481_v52, %v1481_v52 }
 0x181   :  { %v6507_v2 = vpack.i.bf16 %v350_v57, %v342_v31  ;;  %v6510_v4 = vpack.i.bf16 %v353_v58, %v345_v56  ;;  %v1455_v5 = vrot.slane %v1433_v59, %v8752_v15  ;;  %v1462_v8 = vrot.slane %v1434_v1, %v8752_v15  ;;  %v7921_v57 = vld [vmem:[#allocation7 + $0x190] sm:$0xff]   ;;  %v7924_v58 = vld [vmem:[#allocation7 + $0x1d8] sm:$0xff]   ;;  %v7926_v59 = vld [vmem:[#allocation7 + $0x160] sm:$0xff]  }
 0x182   :  { %v1712_v50 = vcombine.high %v6509_v62, %v6509_v62  ;;  %v8801_v63 = vrot.slane %v6509_v62, %v8752_v15  ;;  %v6508_v7 = vpack.i.bf16 %v351_v0, %v343_v61  ;;  %v1463_v30 = vcombine.high %v1441_v6, %v1441_v6  ;;  %v7927_v61 = vld [vmem:[#allocation7 + $0x120] sm:$0xff]  }
 0x183   :  { %v1614_v3 = vcombine.high %v6507_v2, %v6507_v2  ;;  %v1621_v10 = vrot.slane %v6507_v2, %v8752_v15  ;;  %v1761_v11 = vcombine.high %v6510_v4, %v6510_v4  ;;  %v8806_v12 = vrot.slane %v6510_v4, %v8752_v15  ;;  %4978 = vmatprep.mubr.bf16.mxu1 %v1455_v5  ;;  %v7925_v4 = vld [vmem:[#allocation7 + $0x198] sm:$0xff]  }
 0x184   :  { %v8809_v14 = vrot.slane %v1712_v50, %v8752_v15  ;;  %v8813_v16 = vrot.slane %v8801_v63, %v8752_v15  ;;  %v1663_v17 = vcombine.high %v6508_v7, %v6508_v7  ;;  %v8816_v18 = vrot.slane %v6508_v7, %v8752_v15  ;;  %4979 = vmatmul.mubr.bf16.vlgmr.msra.gmra.mrb[0].mxu1 %v1441_v6  ;;  %v7930_v6 = vld [vmem:[#allocation7 + $0x168] sm:$0xff]  }
 0x185   :  { %v1628_v20 = vrot.slane %v1614_v3, %v8752_v15  ;;  %v8820_v21 = vrot.slane %v1621_v10, %v8752_v15  ;;  %v8823_v22 = vrot.slane %v1761_v11, %v8752_v15  ;;  %v8827_v23 = vrot.slane %v8806_v12, %v8752_v15  ;;  %7101 = vmatpush3.bf16.msra.mxu1 %v7911_v60 }
 0x186   :  { %v1677_v24 = vrot.slane %v1663_v17, %v8752_v15  ;;  %v8832_v25 = vrot.slane %v8816_v18, %v8752_v15  ;;  %v1465_v26 = vcombine.high %v1455_v5, %v1455_v5  ;;  %5058 = vmatprep.mubr.bf16.mxu1 %v1462_v8  ;;  %7102 = vmatprep.subr.bf16.mxu1 %v7914_v9  ;;  %v7928_v5 = vld [vmem:[#allocation7 + $0x1e0] sm:$0xff]  }
 0x187   :  { %v1466_v31 = vcombine.high %v1462_v8, %v1462_v8  ;;  %v8835_v33 = vrot.slane %v1481_v52, %v8752_v15  ;;  %v1531_v34 = vcombine.high %v8758_v29, %v8758_v29  ;;  %v1532_v35 = vcombine.high %v8763_v36, %v8763_v36  ;;  %v7923_v29 = vld [vmem:[#allocation7 + $0x118] sm:$0xff]   ;;  %v7931_v8 = vld [vmem:[#allocation7 + $0x128] sm:$0xff]  }
 0x188   :  { %5018 = vmatprep.mubr.bf16.mxu0 %v1465_v26  ;;  %v8842_v40 = vrot.slane %v1483_v32, %v8752_v15  ;;  %v8852_v51 = vrot.slane %v8763_v36, %v8752_v15  ;;  %v1580_v52 = vcombine.high %v8770_v39, %v8770_v39  ;;  %v1581_v54 = vcombine.high %v8780_v46, %v8780_v46  ;;  %v7939_v32 = vld [vmem:[#allocation7 + $0x138] sm:$0xff]  }
 0x189   :  { %5019 = vmatmul.mubr.bf16.vlgmr.msra.gmra.mrb[16].mxu0 %v1463_v30  ;;  %7103 = vmatpush3.bf16.msra.mxu1 %v7915_v13  ;;  %v8845_v48 = vrot.slane %v1531_v34, %v8752_v15  ;;  %v8848_v49 = vrot.slane %v1532_v35, %v8752_v15  ;;  %v8860_v55 = vrot.slane %v8780_v46, %v8752_v15  ;;  %v7936_v30 = vld [vmem:[#allocation7 + $0x1f0] sm:$0xff]   ;;  %v7940_v35 = vld [vmem:[#allocation7 + $0x1f8] sm:$0xff]  }
 0x18a   :  { %7123 = vmatpush3.bf16.msra.mxu0 %v7913_v19  ;;  %5098 = vmatprep.mubr.bf16.mxu0 %v1466_v31  ;;  %v1629_v56 = vcombine.high %v1621_v10, %v1621_v10  ;;  %v8863_v36 = vrot.slane %v1580_v52, %v8752_v15  ;;  %v8866_v60 = vrot.slane %v1581_v54, %v8752_v15  ;;  %v7929_v19 = vld [vmem:[#allocation7 + $0x1a0] sm:$0xff]   ;;  %v7938_v31 = vld [vmem:[#allocation7 + $0x178] sm:$0xff]   ;;  %v7937_v34 = vld [vmem:[#allocation7 + $0x1b0] sm:$0xff]  }
 0x18b   :  { %7124 = vmatprep.subr.bf16.mxu0 %v7916_v27  ;;  %7104 = vmatprep.subr.bf16.mxu1 %v7918_v28  ;;  %v1630_v39 = vcombine.high %v1628_v20, %v1628_v20  ;;  %v8872_v46 = vrot.slane %v1628_v20, %v8752_v15  ;;  %v1678_v1 = vcombine.high %v8816_v18, %v8816_v18  ;;  %v7932_v20 = vld [vmem:[#allocation7 + $0x1e8] sm:$0xff]  }
 0x18c   :  { %v8869_v62 = vrot.slane %v1629_v56, %v8752_v15  ;;  %v1679_v2 = vcombine.high %v1677_v24, %v1677_v24  ;;  %v8883_v7 = vrot.slane %v1677_v24, %v8752_v15  ;;  %v1727_v3 = vcombine.high %v8801_v63, %v8801_v63  ;;  %v7934_v24 = vld [vmem:[#allocation7 + $0x170] sm:$0xff]   ;;  %v7933_v28 = vld [vmem:[#allocation7 + $0x1a8] sm:$0xff]  }
 0x18d   :  { %7105 = vmatpush3.bf16.msra.mxu1 %v7919_v38  ;;  %v8875_v0 = vrot.slane %v1630_v39, %v8752_v15  ;;  %v8880_v50 = vrot.slane %v1678_v1, %v8752_v15  ;;  %v1728_v10 = vcombine.high %v8809_v14, %v8809_v14  ;;  %v8894_v11 = vrot.slane %v8809_v14, %v8752_v15  ;;  %v7942_v38 = vld [vmem:[#allocation7 + $0x240] sm:$0xff]   ;;  %v7946_v52 = vld [vmem:[#allocation7 + $0x248] sm:$0xff]   ;;  %v7952_v1 = vld [vmem:[#allocation7 + $0x2d0] sm:$0xff]  }
 0x18e   :  { %7125 = vmatpush3.bf16.msra.mxu0 %v7917_v42  ;;  %7106 = vmatprep.subr.bf16.mxu1 %v7922_v45  ;;  %v8886_v9 = vrot.slane %v1679_v2, %v8752_v15  ;;  %v1776_v13 = vcombine.high %v8806_v12, %v8806_v12  ;;  %v8899_v17 = vrot.slane %v1727_v3, %v8752_v15  ;;  %v7935_v12 = vld [vmem:[#allocation7 + $0x130] sm:$0xff]   ;;  %v7943_v42 = vld [vmem:[#allocation7 + $0x200] sm:$0xff]   ;;  %v7947_v56 = vld [vmem:[#allocation7 + $0x208] sm:$0xff]  }
 0x18f   :  { %7126 = vmatprep.subr.bf16.mxu0 %v7920_v44  ;;  %v8902_v18 = vrot.slane %v1728_v10, %v8752_v15  ;;  %v1777_v63 = vcombine.high %v8823_v22, %v8823_v22  ;;  %v8914_v27 = vrot.slane %v8823_v22, %v8752_v15  ;;  %v1482_v22 = vcombine.high %v8776_v43, %v8776_v43  ;;  %v7941_v44 = vld [vmem:[#allocation7 + $0x1b8] sm:$0xff]   ;;  %v7948_v43 = vld [vmem:[#allocation7 + $0x2c8] sm:$0xff]   ;;  %v7960_v10 = vld [vmem:[#allocation7 + $0x2e0] sm:$0xff]  }
 0x190   :  { %v8907_v14 = vrot.slane %v1776_v13, %v8752_v15  ;;  %v1448_v45 = vrot.slane %v8773_v41, %v8752_v15  ;;  %v7951_v41 = vld [vmem:[#allocation7 + $0x210] sm:$0xff]   ;;  %v7955_v2 = vld [vmem:[#allocation7 + $0x218] sm:$0xff]   ;;  %v7962_v13 = vld [vmem:[#allocation7 + $0x268] sm:$0xff]  }
 0x191   :  { %7107 = vmatpush3.bf16.msra.mxu1 %v7923_v29  ;;  %v8910_v26 = vrot.slane %v1777_v63, %v8752_v15  ;;  %v7944_v29 = vld [vmem:[#allocation7 + $0x2c0] sm:$0xff]   ;;  %v1504_v54 = vrot.slane %v1482_v22, %v8752_v15  ;;  %v7954_v15 = vld [vmem:[#allocation7 + $0x258] sm:$0xff]   ;;  %v7963_v63 = vld [vmem:[#allocation7 + $0x228] sm:$0xff]  }
 0x192   :  { %7127 = vmatpush3.bf16.msra.mxu0 %v7921_v57  ;;  %7108 = vmatprep.subr.bf16.mxu1 %v7926_v59  ;;  %v7945_v57 = vld [vmem:[#allocation7 + $0x280] sm:$0xff]   ;;  %v1464_v59 = vcombine.high %v1448_v45, %v1448_v45  ;;  %v7957_v3 = vld [vmem:[#allocation7 + $0x298] sm:$0xff]  }
 0x193   :  { %7128 = vmatprep.subr.bf16.mxu0 %v7924_v58  ;;  %v7950_v58 = vld [vmem:[#allocation7 + $0x250] sm:$0xff]   ;;  %v1514_v39 = vcombine.high %v1504_v54, %v1504_v54  ;;  %v7973_v22 = vld [vmem:[#allocation7 + $0x2b8] sm:$0xff]  }
 0x195   :  { %7109 = vmatpush3.bf16.msra.mxu1 %v7927_v61  ;;  %v7949_v61 = vld [vmem:[#allocation7 + $0x288] sm:$0xff]  }
 0x196   :  { %7129 = vmatpush3.bf16.msra.mxu0 %v7925_v4  ;;  %7110 = vmatprep.subr.bf16.mxu1 %v7930_v6  ;;  %v7953_v4 = vld [vmem:[#allocation7 + $0x290] sm:$0xff]   ;;  %v7958_v6 = vld [vmem:[#allocation7 + $0x260] sm:$0xff]  }
 0x197   :  { %7130 = vmatprep.subr.bf16.mxu0 %v7928_v5  ;;  %v7956_v5 = vld [vmem:[#allocation7 + $0x2d8] sm:$0xff]  }
 0x199   :  { %7111 = vmatpush3.bf16.msra.mxu1 %v7931_v8  ;;  %v7959_v8 = vld [vmem:[#allocation7 + $0x220] sm:$0xff]  }
 0x19a   :  { %7131 = vmatpush3.bf16.msra.mxu0 %v7929_v19  ;;  %7112 = vmatprep.subr.bf16.mxu1 %v7934_v24  ;;  %v7961_v19 = vld [vmem:[#allocation7 + $0x2a0] sm:$0xff]   ;;  %v7966_v24 = vld [vmem:[#allocation7 + $0x270] sm:$0xff]  }
 0x19b   :  { %7132 = vmatprep.subr.bf16.mxu0 %v7932_v20  ;;  %v7964_v20 = vld [vmem:[#allocation7 + $0x2e8] sm:$0xff]  }
 0x19d   :  { %7113 = vmatpush3.bf16.msra.mxu1 %v7935_v12  ;;  %v7967_v12 = vld [vmem:[#allocation7 + $0x230] sm:$0xff]  }
 0x19e   :  { %7133 = vmatpush3.bf16.msra.mxu0 %v7933_v28  ;;  %7114 = vmatprep.subr.bf16.mxu1 %v7938_v31  ;;  %v7965_v28 = vld [vmem:[#allocation7 + $0x2a8] sm:$0xff]   ;;  %v7970_v31 = vld [vmem:[#allocation7 + $0x278] sm:$0xff]  }
 0x19f   :  { %7134 = vmatprep.subr.bf16.mxu0 %v7936_v30  ;;  %v7968_v30 = vld [vmem:[#allocation7 + $0x2f0] sm:$0xff]  }
 0x1a1   :  { %7115 = vmatpush3.bf16.msra.mxu1 %v7939_v32  ;;  %v7971_v32 = vld [vmem:[#allocation7 + $0x238] sm:$0xff]  }
 0x1a2   :  { %7135 = vmatpush3.bf16.msra.mxu0 %v7937_v34  ;;  %7144 = vmatprep.subr.bf16.mxu1 %v7942_v38  ;;  %v7969_v34 = vld [vmem:[#allocation7 + $0x2b0] sm:$0xff]   ;;  %v7974_v38 = vld [vmem:[#allocation7 + $0x340] sm:$0xff]  }
 0x1a3   :  { %7136 = vmatprep.subr.bf16.mxu0 %v7940_v35  ;;  %v7972_v35 = vld [vmem:[#allocation7 + $0x2f8] sm:$0xff]  }
 0x1a4   :  { %5059 = vmatmul.mubr.bf16.vlgmr.msra.gmra.mrb[4].mxu1 %v1448_v45  ;;  %v7978_v45 = vld [vmem:[#allocation7 + $0x348] sm:$0xff]  }
 0x1a5   :  { %7145 = vmatpush3.bf16.msra.mxu1 %v7943_v42  ;;  %5138 = vmatprep.mubr.bf16.mxu1 %v1504_v54  ;;  %v7975_v42 = vld [vmem:[#allocation7 + $0x300] sm:$0xff]   ;;  %v7980_v54 = vld [vmem:[#allocation7 + $0x3c8] sm:$0xff]  }
 0x1a6   :  { %7137 = vmatpush3.bf16.msra.mxu0 %v7941_v44  ;;  %7146 = vmatprep.subr.bf16.mxu1 %v7946_v52  ;;  %v7976_v44 = vld [vmem:[#allocation7 + $0x3c0] sm:$0xff]  }
 0x1a7   :  { %7166 = vmatprep.subr.bf16.mxu0 %v7944_v29  ;;  %v7979_v29 = vld [vmem:[#allocation7 + $0x308] sm:$0xff]   ;;  %v7977_v52 = vld [vmem:[#allocation7 + $0x380] sm:$0xff]  }
 0x1a9   :  { %5099 = vmatmul.mubr.bf16.vlgmr.msra.gmra.mrb[20].mxu0 %v1464_v59  ;;  %7147 = vmatpush3.bf16.msra.mxu1 %v7947_v56  ;;  %v7982_v56 = vld [vmem:[#allocation7 + $0x350] sm:$0xff]   ;;  %v7981_v59 = vld [vmem:[#allocation7 + $0x388] sm:$0xff]  }
 0x1aa   :  { %7167 = vmatpush3.bf16.msra.mxu0 %v7945_v57  ;;  %5178 = vmatprep.mubr.bf16.mxu0 %v1514_v39  ;;  %v1512_v57 = vcombine.high %v8791_v53, %v8791_v53  ;;  %v7984_v39 = vld [vmem:[#allocation7 + $0x3d0] sm:$0xff]  }
 0x1ab   :  { %7168 = vmatprep.subr.bf16.mxu0 %v7948_v43  ;;  %7148 = vmatprep.subr.bf16.mxu1 %v7950_v58  ;;  %v1515_v43 = vcombine.high %v8842_v40, %v8842_v40  ;;  %v7983_v58 = vld [vmem:[#allocation7 + $0x310] sm:$0xff]  }
 0x1ad   :  { %7149 = vmatpush3.bf16.msra.mxu1 %v7951_v41  ;;  %v7986_v41 = vld [vmem:[#allocation7 + $0x358] sm:$0xff]  }
 0x1ae   :  { %7169 = vmatpush3.bf16.msra.mxu0 %v7949_v61  ;;  %7150 = vmatprep.subr.bf16.mxu1 %v7954_v15  ;;  %v7987_v61 = vld [vmem:[#allocation7 + $0x318] sm:$0xff]   ;;  %v7990_v15 = vld [vmem:[#allocation7 + $0x360] sm:$0xff]  }
 0x1af   :  { %7170 = vmatprep.subr.bf16.mxu0 %v7952_v1  ;;  %v7985_v1 = vld [vmem:[#allocation7 + $0x390] sm:$0xff]  }
 0x1b1   :  { %7151 = vmatpush3.bf16.msra.mxu1 %v7955_v2  ;;  %v7991_v2 = vld [vmem:[#allocation7 + $0x320] sm:$0xff]  }
 0x1b2   :  { %7171 = vmatpush3.bf16.msra.mxu0 %v7953_v4  ;;  %7152 = vmatprep.subr.bf16.mxu1 %v7958_v6  ;;  %v7992_v4 = vld [vmem:[#allocation7 + $0x3e0] sm:$0xff]   ;;  %v7995_v6 = vld [vmem:[#allocation7 + $0x328] sm:$0xff]  }
 0x1b3   :  { %7172 = vmatprep.subr.bf16.mxu0 %v7956_v5  ;;  %v7994_v5 = vld [vmem:[#allocation7 + $0x368] sm:$0xff]  }
 0x1b5   :  { %7153 = vmatpush3.bf16.msra.mxu1 %v7959_v8  ;;  %v7993_v8 = vld [vmem:[#allocation7 + $0x3a0] sm:$0xff]  }
 0x1b6   :  { %7173 = vmatpush3.bf16.msra.mxu0 %v7957_v3  ;;  %7154 = vmatprep.subr.bf16.mxu1 %v7962_v13  ;;  %v7996_v3 = vld [vmem:[#allocation7 + $0x3e8] sm:$0xff]   ;;  %v7999_v13 = vld [vmem:[#allocation7 + $0x330] sm:$0xff]  }
 0x1b7   :  { %7174 = vmatprep.subr.bf16.mxu0 %v7960_v10  ;;  %v7998_v10 = vld [vmem:[#allocation7 + $0x370] sm:$0xff]  }
 0x1b9   :  { %7155 = vmatpush3.bf16.msra.mxu1 %v7963_v63  ;;  %v7997_v63 = vld [vmem:[#allocation7 + $0x3a8] sm:$0xff]  }
 0x1ba   :  { %7175 = vmatpush3.bf16.msra.mxu0 %v7961_v19  ;;  %7156 = vmatprep.subr.bf16.mxu1 %v7966_v24  ;;  %v8000_v19 = vld [vmem:[#allocation7 + $0x3f0] sm:$0xff]   ;;  %v8003_v24 = vld [vmem:[#allocation7 + $0x338] sm:$0xff]  }
 0x1bb   :  { %7176 = vmatprep.subr.bf16.mxu0 %v7964_v20  ;;  %v8002_v20 = vld [vmem:[#allocation7 + $0x378] sm:$0xff]  }
 0x1bd   :  { %7157 = vmatpush3.bf16.msra.mxu1 %v7967_v12  ;;  %v8001_v12 = vld [vmem:[#allocation7 + $0x3b0] sm:$0xff]  }
 0x1be   :  { %7177 = vmatpush3.bf16.msra.mxu0 %v7965_v28  ;;  %7158 = vmatprep.subr.bf16.mxu1 %v7970_v31  ;;  %v8006_v28 = vld [vmem:[#allocation7 + $0x440] sm:$0xff]  }
 0x1bf   :  { %7178 = vmatprep.subr.bf16.mxu0 %v7968_v30  ;;  %v8004_v30 = vld [vmem:[#allocation7 + $0x3f8] sm:$0xff]   ;;  %v8007_v31 = vld [vmem:[#allocation7 + $0x400] sm:$0xff]  }
 0x1c1   :  { %7159 = vmatpush3.bf16.msra.mxu1 %v7971_v32  ;;  %v8005_v32 = vld [vmem:[#allocation7 + $0x3b8] sm:$0xff]  }
 0x1c2   :  { %7179 = vmatpush3.bf16.msra.mxu0 %v7969_v34  ;;  %7188 = vmatprep.subr.bf16.mxu1 %v7974_v38  ;;  %v8008_v34 = vld [vmem:[#allocation7 + $0x4c0] sm:$0xff]   ;;  %v8011_v38 = vld [vmem:[#allocation7 + $0x408] sm:$0xff]  }
 0x1c3   :  { %7180 = vmatprep.subr.bf16.mxu0 %v7972_v35  ;;  %v8010_v35 = vld [vmem:[#allocation7 + $0x448] sm:$0xff]  }
 0x1c4   :  { %5139 = vmatmul.mubr.bf16.vlgmr.msra.gmra.mrb[8].mxu1 %v8791_v53  ;;  %v7988_v53 = vld [vmem:[#allocation7 + $0x3d8] sm:$0xff]  }
 0x1c5   :  { %7189 = vmatpush3.bf16.msra.mxu1 %v7975_v42  ;;  %5218 = vmatprep.mubr.bf16.mxu1 %v8842_v40  ;;  %v7989_v40 = vld [vmem:[#allocation7 + $0x398] sm:$0xff]   ;;  %v8009_v42 = vld [vmem:[#allocation7 + $0x480] sm:$0xff]  }
 0x1c6   :  { %7181 = vmatpush3.bf16.msra.mxu0 %v7973_v22  ;;  %7190 = vmatprep.subr.bf16.mxu1 %v7978_v45  ;;  %v8012_v22 = vld [vmem:[#allocation7 + $0x4c8] sm:$0xff]   ;;  %v1513_v45 = vcombine.high %v8835_v33, %v8835_v33 }
 0x1c7   :  { %7210 = vmatprep.subr.bf16.mxu0 %v7976_v44  ;;  %v8014_v44 = vld [vmem:[#allocation7 + $0x450] sm:$0xff]  }
 0x1c9   :  { %5179 = vmatmul.mubr.bf16.vlgmr.msra.gmra.mrb[24].mxu0 %v1512_v57  ;;  %7191 = vmatpush3.bf16.msra.mxu1 %v7979_v29  ;;  %v1563_v29 = vcombine.high %v8845_v48, %v8845_v48  ;;  %v8018_v57 = vld [vmem:[#allocation7 + $0x458] sm:$0xff]  }
 0x1ca   :  { %7211 = vmatpush3.bf16.msra.mxu0 %v7977_v52  ;;  %5258 = vmatprep.mubr.bf16.mxu0 %v1515_v43  ;;  %v8015_v52 = vld [vmem:[#allocation7 + $0x410] sm:$0xff]   ;;  %v8019_v43 = vld [vmem:[#allocation7 + $0x418] sm:$0xff]  }
 0x1cb   :  { %7212 = vmatprep.subr.bf16.mxu0 %v7980_v54  ;;  %7192 = vmatprep.subr.bf16.mxu1 %v7982_v56  ;;  %v8013_v54 = vld [vmem:[#allocation7 + $0x488] sm:$0xff]   ;;  %v8016_v56 = vld [vmem:[#allocation7 + $0x4d0] sm:$0xff]  }
 0x1cd   :  { %7193 = vmatpush3.bf16.msra.mxu1 %v7983_v58  ;;  %v8017_v58 = vld [vmem:[#allocation7 + $0x490] sm:$0xff]  }
 0x1ce   :  { %7213 = vmatpush3.bf16.msra.mxu0 %v7981_v59  ;;  %7194 = vmatprep.subr.bf16.mxu1 %v7986_v41  ;;  %v8022_v59 = vld [vmem:[#allocation7 + $0x460] sm:$0xff]  }
 0x1cf   :  { %7214 = vmatprep.subr.bf16.mxu0 %v7984_v39  ;;  %v8023_v39 = vld [vmem:[#allocation7 + $0x420] sm:$0xff]  }
 0x1d0   :  { %v8024_v41 = vld [vmem:[#allocation7 + $0x4e0] sm:$0xff]  }
 0x1d1   :  { %7195 = vmatpush3.bf16.msra.mxu1 %v7987_v61  ;;  %v8026_v61 = vld [vmem:[#allocation7 + $0x468] sm:$0xff]  }
 0x1d2   :  { %7215 = vmatpush3.bf16.msra.mxu0 %v7985_v1  ;;  %7196 = vmatprep.subr.bf16.mxu1 %v7990_v15  ;;  %v8027_v1 = vld [vmem:[#allocation7 + $0x428] sm:$0xff]  }
 0x1d3   :  { %7216 = vmatprep.subr.bf16.mxu0 %v7988_v53  ;;  %v8025_v53 = vld [vmem:[#allocation7 + $0x4a0] sm:$0xff]   ;;  %v8028_v15 = vld [vmem:[#allocation7 + $0x4e8] sm:$0xff]  }
 0x1d5   :  { %7197 = vmatpush3.bf16.msra.mxu1 %v7991_v2  ;;  %v8030_v2 = vld [vmem:[#allocation7 + $0x470] sm:$0xff]  }
 0x1d6   :  { %7217 = vmatpush3.bf16.msra.mxu0 %v7989_v40  ;;  %7198 = vmatprep.subr.bf16.mxu1 %v7994_v5  ;;  %v8031_v40 = vld [vmem:[#allocation7 + $0x430] sm:$0xff]   ;;  %v8034_v5 = vld [vmem:[#allocation7 + $0x478] sm:$0xff]  }
 0x1d7   :  { %7218 = vmatprep.subr.bf16.mxu0 %v7992_v4  ;;  %v8029_v4 = vld [vmem:[#allocation7 + $0x4a8] sm:$0xff]  }
 0x1d9   :  { %7199 = vmatpush3.bf16.msra.mxu1 %v7995_v6  ;;  %v8032_v6 = vld [vmem:[#allocation7 + $0x4f0] sm:$0xff]  }
 0x1da   :  { %7219 = vmatpush3.bf16.msra.mxu0 %v7993_v8  ;;  %7200 = vmatprep.subr.bf16.mxu1 %v7998_v10  ;;  %v8035_v8 = vld [vmem:[#allocation7 + $0x438] sm:$0xff]   ;;  %v8038_v10 = vld [vmem:[#allocation7 + $0x540] sm:$0xff]  }
 0x1db   :  { %7220 = vmatprep.subr.bf16.mxu0 %v7996_v3  ;;  %v8033_v3 = vld [vmem:[#allocation7 + $0x4b0] sm:$0xff]  }
 0x1dd   :  { %7201 = vmatpush3.bf16.msra.mxu1 %v7999_v13  ;;  %v8036_v13 = vld [vmem:[#allocation7 + $0x4f8] sm:$0xff]  }
 0x1de   :  { %7221 = vmatpush3.bf16.msra.mxu0 %v7997_v63  ;;  %7202 = vmatprep.subr.bf16.mxu1 %v8002_v20  ;;  %v8039_v63 = vld [vmem:[#allocation7 + $0x500] sm:$0xff]  }
 0x1df   :  { %7222 = vmatprep.subr.bf16.mxu0 %v8000_v19  ;;  %v8037_v19 = vld [vmem:[#allocation7 + $0x4b8] sm:$0xff]   ;;  %v8040_v20 = vld [vmem:[#allocation7 + $0x5c0] sm:$0xff]  }
 0x1e1   :  { %7203 = vmatpush3.bf16.msra.mxu1 %v8003_v24  ;;  %v8042_v24 = vld [vmem:[#allocation7 + $0x548] sm:$0xff]  }
 0x1e2   :  { %7223 = vmatpush3.bf16.msra.mxu0 %v8001_v12  ;;  %7232 = vmatprep.subr.bf16.mxu1 %v8006_v28  ;;  %v8043_v12 = vld [vmem:[#allocation7 + $0x508] sm:$0xff]   ;;  %v8041_v28 = vld [vmem:[#allocation7 + $0x580] sm:$0xff]  }
 0x1e3   :  { %7224 = vmatprep.subr.bf16.mxu0 %v8004_v30  ;;  %v8044_v30 = vld [vmem:[#allocation7 + $0x5c8] sm:$0xff]  }
 0x1e4   :  { %5219 = vmatmul.mubr.bf16.vlgmr.msra.gmra.mrb[12].mxu1 %v8835_v33  ;;  %v8020_v33 = vld [vmem:[#allocation7 + $0x4d8] sm:$0xff]  }
 0x1e5   :  { %7233 = vmatpush3.bf16.msra.mxu1 %v8007_v31  ;;  %5298 = vmatprep.mubr.bf16.mxu1 %v8845_v48  ;;  %v8021_v48 = vld [vmem:[#allocation7 + $0x498] sm:$0xff]   ;;  %v8046_v31 = vld [vmem:[#allocation7 + $0x550] sm:$0xff]  }
 0x1e6   :  { %7225 = vmatpush3.bf16.msra.mxu0 %v8005_v32  ;;  %7234 = vmatprep.subr.bf16.mxu1 %v8010_v35  ;;  %v1561_v32 = vcombine.high %v8767_v37, %v8767_v37  ;;  %v8047_v35 = vld [vmem:[#allocation7 + $0x510] sm:$0xff]  }
 0x1e7   :  { %7254 = vmatprep.subr.bf16.mxu0 %v8008_v34  ;;  %v1564_v34 = vcombine.high %v8848_v49, %v8848_v49 }
 0x1e9   :  { %5259 = vmatmul.mubr.bf16.vlgmr.msra.gmra.mrb[28].mxu0 %v1513_v45  ;;  %7235 = vmatpush3.bf16.msra.mxu1 %v8011_v38  ;;  %v8045_v38 = vld [vmem:[#allocation7 + $0x588] sm:$0xff]   ;;  %v8049_v45 = vld [vmem:[#allocation7 + $0x590] sm:$0xff]  }
 0x1ea   :  { %7255 = vmatpush3.bf16.msra.mxu0 %v8009_v42  ;;  %5338 = vmatprep.mubr.bf16.mxu0 %v1563_v29  ;;  %v8048_v42 = vld [vmem:[#allocation7 + $0x5d0] sm:$0xff]   ;;  %v8054_v29 = vld [vmem:[#allocation7 + $0x560] sm:$0xff]  }
 0x1eb   :  { %7256 = vmatprep.subr.bf16.mxu0 %v8012_v22  ;;  %7236 = vmatprep.subr.bf16.mxu1 %v8014_v44  ;;  %v8050_v22 = vld [vmem:[#allocation7 + $0x558] sm:$0xff]  }
 0x1ec   :  { %v8051_v44 = vld [vmem:[#allocation7 + $0x518] sm:$0xff]  }
 0x1ed   :  { %7237 = vmatpush3.bf16.msra.mxu1 %v8015_v52  ;;  %v8055_v52 = vld [vmem:[#allocation7 + $0x520] sm:$0xff]  }
 0x1ee   :  { %7257 = vmatpush3.bf16.msra.mxu0 %v8013_v54  ;;  %7238 = vmatprep.subr.bf16.mxu1 %v8018_v57  ;;  %v8056_v54 = vld [vmem:[#allocation7 + $0x5e0] sm:$0xff]   ;;  %v8059_v57 = vld [vmem:[#allocation7 + $0x528] sm:$0xff]  }
 0x1ef   :  { %7258 = vmatprep.subr.bf16.mxu0 %v8016_v56  ;;  %v8058_v56 = vld [vmem:[#allocation7 + $0x568] sm:$0xff]  }
 0x1f1   :  { %7239 = vmatpush3.bf16.msra.mxu1 %v8019_v43  ;;  %v8057_v43 = vld [vmem:[#allocation7 + $0x5a0] sm:$0xff]  }
 0x1f2   :  { %7259 = vmatpush3.bf16.msra.mxu0 %v8017_v58  ;;  %7240 = vmatprep.subr.bf16.mxu1 %v8022_v59  ;;  %v8060_v58 = vld [vmem:[#allocation7 + $0x5e8] sm:$0xff]   ;;  %v8063_v59 = vld [vmem:[#allocation7 + $0x530] sm:$0xff]  }
 0x1f3   :  { %7260 = vmatprep.subr.bf16.mxu0 %v8020_v33  ;;  %v8062_v33 = vld [vmem:[#allocation7 + $0x570] sm:$0xff]  }
 0x1f5   :  { %7241 = vmatpush3.bf16.msra.mxu1 %v8023_v39  ;;  %v8061_v39 = vld [vmem:[#allocation7 + $0x5a8] sm:$0xff]  }
 0x1f6   :  { %7261 = vmatpush3.bf16.msra.mxu0 %v8021_v48  ;;  %7242 = vmatprep.subr.bf16.mxu1 %v8026_v61  ;;  %v8066_v48 = vld [vmem:[#allocation7 + $0x578] sm:$0xff]  }
 0x1f7   :  { %7262 = vmatprep.subr.bf16.mxu0 %v8024_v41  ;;  %v8064_v41 = vld [vmem:[#allocation7 + $0x5f0] sm:$0xff]   ;;  %v8067_v61 = vld [vmem:[#allocation7 + $0x538] sm:$0xff]  }
 0x1f9   :  { %7243 = vmatpush3.bf16.msra.mxu1 %v8027_v1  ;;  %v8065_v1 = vld [vmem:[#allocation7 + $0x5b0] sm:$0xff]  }
 0x1fa   :  { %7263 = vmatpush3.bf16.msra.mxu0 %v8025_v53  ;;  %7244 = vmatprep.subr.bf16.mxu1 %v8030_v2  ;;  %v8070_v53 = vld [vmem:[#allocation7 + $0x640] sm:$0xff]  }
 0x1fb   :  { %7264 = vmatprep.subr.bf16.mxu0 %v8028_v15  ;;  %v8068_v15 = vld [vmem:[#allocation7 + $0x5f8] sm:$0xff]   ;;  %v8071_v2 = vld [vmem:[#allocation7 + $0x600] sm:$0xff]  }
 0x1fd   :  { %7245 = vmatpush3.bf16.msra.mxu1 %v8031_v40  ;;  %v8069_v40 = vld [vmem:[#allocation7 + $0x5b8] sm:$0xff]  }
 0x1fe   :  { %7265 = vmatpush3.bf16.msra.mxu0 %v8029_v4  ;;  %7246 = vmatprep.subr.bf16.mxu1 %v8034_v5  ;;  %v8072_v4 = vld [vmem:[#allocation7 + $0x6c0] sm:$0xff]   ;;  %v8074_v5 = vld [vmem:[#allocation7 + $0x648] sm:$0xff]  }
 0x1ff   :  { %7266 = vmatprep.subr.bf16.mxu0 %v8032_v6  ;;  %v8075_v6 = vld [vmem:[#allocation7 + $0x608] sm:$0xff]  }
 0x201   :  { %7247 = vmatpush3.bf16.msra.mxu1 %v8035_v8  ;;  %v8073_v8 = vld [vmem:[#allocation7 + $0x680] sm:$0xff]  }
 0x202   :  { %7267 = vmatpush3.bf16.msra.mxu0 %v8033_v3  ;;  %7276 = vmatprep.subr.bf16.mxu1 %v8038_v10  ;;  %v8076_v3 = vld [vmem:[#allocation7 + $0x6c8] sm:$0xff]   ;;  %v8078_v10 = vld [vmem:[#allocation7 + $0x650] sm:$0xff]  }
 0x203   :  { %7268 = vmatprep.subr.bf16.mxu0 %v8036_v13  ;;  %v1562_v13 = vcombine.high %v8852_v51, %v8852_v51 }
 0x204   :  { %5299 = vmatmul.mubr.bf16.vlgmr.msra.gmra.mrb[16].mxu1 %v8767_v37  ;;  %v8052_v37 = vld [vmem:[#allocation7 + $0x5d8] sm:$0xff]  }
 0x205   :  { %7277 = vmatpush3.bf16.msra.mxu1 %v8039_v63  ;;  %5378 = vmatprep.mubr.bf16.mxu1 %v8848_v49  ;;  %v8053_v49 = vld [vmem:[#allocation7 + $0x598] sm:$0xff]   ;;  %v1612_v63 = vcombine.high %v8863_v36, %v8863_v36 }
 0x206   :  { %7269 = vmatpush3.bf16.msra.mxu0 %v8037_v19  ;;  %7278 = vmatprep.subr.bf16.mxu1 %v8042_v24  ;;  %v8079_v19 = vld [vmem:[#allocation7 + $0x610] sm:$0xff]  }
 0x207   :  { %7298 = vmatprep.subr.bf16.mxu0 %v8040_v20  ;;  %v8077_v20 = vld [vmem:[#allocation7 + $0x688] sm:$0xff]   ;;  %v8080_v24 = vld [vmem:[#allocation7 + $0x6d0] sm:$0xff]  }
 0x209   :  { %5339 = vmatmul.mubr.bf16.vlgmr.msra.gmra.mrb[32].mxu0 %v1561_v32  ;;  %7279 = vmatpush3.bf16.msra.mxu1 %v8043_v12  ;;  %v8082_v12 = vld [vmem:[#allocation7 + $0x658] sm:$0xff]   ;;  %v8087_v32 = vld [vmem:[#allocation7 + $0x620] sm:$0xff]  }
 0x20a   :  { %7299 = vmatpush3.bf16.msra.mxu0 %v8041_v28  ;;  %5418 = vmatprep.mubr.bf16.mxu0 %v1564_v34  ;;  %v8083_v28 = vld [vmem:[#allocation7 + $0x618] sm:$0xff]   ;;  %v8088_v34 = vld [vmem:[#allocation7 + $0x6e0] sm:$0xff]  }
 0x20b   :  { %7300 = vmatprep.subr.bf16.mxu0 %v8044_v30  ;;  %7280 = vmatprep.subr.bf16.mxu1 %v8046_v31  ;;  %v8081_v30 = vld [vmem:[#allocation7 + $0x690] sm:$0xff]   ;;  %v8086_v31 = vld [vmem:[#allocation7 + $0x660] sm:$0xff]  }
 0x20d   :  { %7281 = vmatpush3.bf16.msra.mxu1 %v8047_v35  ;;  %v8090_v35 = vld [vmem:[#allocation7 + $0x668] sm:$0xff]  }
 0x20e   :  { %7301 = vmatpush3.bf16.msra.mxu0 %v8045_v38  ;;  %7282 = vmatprep.subr.bf16.mxu1 %v8050_v22  ;;  %v8091_v38 = vld [vmem:[#allocation7 + $0x628] sm:$0xff]  }
 0x20f   :  { %7302 = vmatprep.subr.bf16.mxu0 %v8048_v42  ;;  %v8089_v42 = vld [vmem:[#allocation7 + $0x6a0] sm:$0xff]   ;;  %v8092_v22 = vld [vmem:[#allocation7 + $0x6e8] sm:$0xff]  }
 0x211   :  { %7283 = vmatpush3.bf16.msra.mxu1 %v8051_v44  ;;  %v8094_v44 = vld [vmem:[#allocation7 + $0x670] sm:$0xff]  }
 0x212   :  { %7303 = vmatpush3.bf16.msra.mxu0 %v8049_v45  ;;  %7284 = vmatprep.subr.bf16.mxu1 %v8054_v29  ;;  %v8095_v45 = vld [vmem:[#allocation7 + $0x630] sm:$0xff]   ;;  %v8098_v29 = vld [vmem:[#allocation7 + $0x678] sm:$0xff]  }
 0x213   :  { %7304 = vmatprep.subr.bf16.mxu0 %v8052_v37  ;;  %v8093_v37 = vld [vmem:[#allocation7 + $0x6a8] sm:$0xff]  }
 0x215   :  { %7285 = vmatpush3.bf16.msra.mxu1 %v8055_v52  ;;  %v8096_v52 = vld [vmem:[#allocation7 + $0x6f0] sm:$0xff]  }
 0x216   :  { %7305 = vmatpush3.bf16.msra.mxu0 %v8053_v49  ;;  %7286 = vmatprep.subr.bf16.mxu1 %v8058_v56  ;;  %v8099_v49 = vld [vmem:[#allocation7 + $0x638] sm:$0xff]   ;;  %v8102_v56 = vld [vmem:[#allocation7 + $0x740] sm:$0xff]  }
 0x217   :  { %7306 = vmatprep.subr.bf16.mxu0 %v8056_v54  ;;  %v8097_v54 = vld [vmem:[#allocation7 + $0x6b0] sm:$0xff]  }
 0x219   :  { %7287 = vmatpush3.bf16.msra.mxu1 %v8059_v57  ;;  %v8100_v57 = vld [vmem:[#allocation7 + $0x6f8] sm:$0xff]  }
 0x21a   :  { %7307 = vmatpush3.bf16.msra.mxu0 %v8057_v43  ;;  %7288 = vmatprep.subr.bf16.mxu1 %v8062_v33  ;;  %v8103_v43 = vld [vmem:[#allocation7 + $0x700] sm:$0xff]  }
 0x21b   :  { %7308 = vmatprep.subr.bf16.mxu0 %v8060_v58  ;;  %v8101_v58 = vld [vmem:[#allocation7 + $0x6b8] sm:$0xff]   ;;  %v8104_v33 = vld [vmem:[#allocation7 + $0x7c0] sm:$0xff]  }
 0x21d   :  { %7289 = vmatpush3.bf16.msra.mxu1 %v8063_v59  ;;  %v8106_v59 = vld [vmem:[#allocation7 + $0x748] sm:$0xff]  }
 0x21e   :  { %7309 = vmatpush3.bf16.msra.mxu0 %v8061_v39  ;;  %7290 = vmatprep.subr.bf16.mxu1 %v8066_v48  ;;  %v8107_v39 = vld [vmem:[#allocation7 + $0x708] sm:$0xff]   ;;  %v8105_v48 = vld [vmem:[#allocation7 + $0x780] sm:$0xff]  }
 0x21f   :  { %7310 = vmatprep.subr.bf16.mxu0 %v8064_v41  ;;  %v8108_v41 = vld [vmem:[#allocation7 + $0x7c8] sm:$0xff]  }
 0x221   :  { %7291 = vmatpush3.bf16.msra.mxu1 %v8067_v61  ;;  %v8110_v61 = vld [vmem:[#allocation7 + $0x750] sm:$0xff]  }
 0x222   :  { %7311 = vmatpush3.bf16.msra.mxu0 %v8065_v1  ;;  %7320 = vmatprep.subr.bf16.mxu1 %v8070_v53  ;;  %v1610_v1 = vcombine.high %v8784_v47, %v8784_v47  ;;  %v1613_v53 = vcombine.high %v8866_v60, %v8866_v60 }
 0x223   :  { %7312 = vmatprep.subr.bf16.mxu0 %v8068_v15  ;;  %v8111_v15 = vld [vmem:[#allocation7 + $0x710] sm:$0xff]  }
 0x224   :  { %5379 = vmatmul.mubr.bf16.vlgmr.msra.gmra.mrb[20].mxu1 %v8852_v51  ;;  %v8084_v51 = vld [vmem:[#allocation7 + $0x6d8] sm:$0xff]  }
 0x225   :  { %7321 = vmatpush3.bf16.msra.mxu1 %v8071_v2  ;;  %5458 = vmatprep.mubr.bf16.mxu1 %v8863_v36  ;;  %v8085_v36 = vld [vmem:[#allocation7 + $0x698] sm:$0xff]   ;;  %v8109_v2 = vld [vmem:[#allocation7 + $0x788] sm:$0xff]  }
 0x226   :  { %7313 = vmatpush3.bf16.msra.mxu0 %v8069_v40  ;;  %7322 = vmatprep.subr.bf16.mxu1 %v8074_v5  ;;  %v8112_v40 = vld [vmem:[#allocation7 + $0x7d0] sm:$0xff]   ;;  %v8115_v5 = vld [vmem:[#allocation7 + $0x718] sm:$0xff]  }
 0x227   :  { %7342 = vmatprep.subr.bf16.mxu0 %v8072_v4  ;;  %v8114_v4 = vld [vmem:[#allocation7 + $0x758] sm:$0xff]  }
 0x229   :  { %5419 = vmatmul.mubr.bf16.vlgmr.msra.gmra.mrb[36].mxu0 %v1562_v13  ;;  %7323 = vmatpush3.bf16.msra.mxu1 %v8075_v6  ;;  %v8113_v6 = vld [vmem:[#allocation7 + $0x790] sm:$0xff]   ;;  %v8122_v13 = vld [vmem:[#allocation7 + $0x768] sm:$0xff]  }
 0x22a   :  { %7343 = vmatpush3.bf16.msra.mxu0 %v8073_v8  ;;  %5498 = vmatprep.mubr.bf16.mxu0 %v1612_v63  ;;  %v8118_v8 = vld [vmem:[#allocation7 + $0x760] sm:$0xff]   ;;  %v8123_v63 = vld [vmem:[#allocation7 + $0x728] sm:$0xff]  }
 0x22b   :  { %7344 = vmatprep.subr.bf16.mxu0 %v8076_v3  ;;  %7324 = vmatprep.subr.bf16.mxu1 %v8078_v10  ;;  %v8119_v3 = vld [vmem:[#allocation7 + $0x720] sm:$0xff]  }
 0x22c   :  { %v8120_v10 = vld [vmem:[#allocation7 + $0x7e0] sm:$0xff]  }
 0x22d   :  { %7325 = vmatpush3.bf16.msra.mxu1 %v8079_v19  ;;  %v8121_v19 = vld [vmem:[#allocation7 + $0x7a0] sm:$0xff]  }
 0x22e   :  { %7345 = vmatpush3.bf16.msra.mxu0 %v8077_v20  ;;  %7326 = vmatprep.subr.bf16.mxu1 %v8082_v12  ;;  %v8126_v20 = vld [vmem:[#allocation7 + $0x770] sm:$0xff]   ;;  %v8124_v12 = vld [vmem:[#allocation7 + $0x7e8] sm:$0xff]  }
 0x22f   :  { %7346 = vmatprep.subr.bf16.mxu0 %v8080_v24 }
 0x231   :  { %7327 = vmatpush3.bf16.msra.mxu1 %v8083_v28 }
 0x232   :  { %7347 = vmatpush3.bf16.msra.mxu0 %v8081_v30  ;;  %7328 = vmatprep.subr.bf16.mxu1 %v8086_v31  ;;  %v8125_v30 = vld [vmem:[#allocation7 + $0x7a8] sm:$0xff]  }
 0x233   :  { %7348 = vmatprep.subr.bf16.mxu0 %v8084_v51 }
 0x235   :  { %7329 = vmatpush3.bf16.msra.mxu1 %v8087_v32  ;;  %v8127_v32 = vld [vmem:[#allocation7 + $0x730] sm:$0xff]  }
 0x236   :  { %7349 = vmatpush3.bf16.msra.mxu0 %v8085_v36  ;;  %7330 = vmatprep.subr.bf16.mxu1 %v8090_v35  ;;  %v8128_v35 = vld [vmem:[#allocation7 + $0x7f0] sm:$0xff]  }
 0x237   :  { %7350 = vmatprep.subr.bf16.mxu0 %v8088_v34  ;;  %v8130_v34 = vld [vmem:[#allocation7 + $0x778] sm:$0xff]  }
 0x239   :  { %7331 = vmatpush3.bf16.msra.mxu1 %v8091_v38 }
 0x23a   :  { %7351 = vmatpush3.bf16.msra.mxu0 %v8089_v42  ;;  %7332 = vmatprep.subr.bf16.mxu1 %v8094_v44  ;;  %v8129_v42 = vld [vmem:[#allocation7 + $0x7b0] sm:$0xff]   ;;  %v8131_v44 = vld [vmem:[#allocation7 + $0x738] sm:$0xff]  }
 0x23b   :  { %7352 = vmatprep.subr.bf16.mxu0 %v8092_v22 }
 0x23d   :  { %7333 = vmatpush3.bf16.msra.mxu1 %v8095_v45 }
 0x23e   :  { %7353 = vmatpush3.bf16.msra.mxu0 %v8093_v37  ;;  %7334 = vmatprep.subr.bf16.mxu1 %v8098_v29  ;;  %v8134_v29 = vld [vmem:[#allocation7 + $0x840] sm:$0xff]  }
 0x23f   :  { %7354 = vmatprep.subr.bf16.mxu0 %v8096_v52 }
 0x241   :  { %7335 = vmatpush3.bf16.msra.mxu1 %v8099_v49  ;;  %v8132_v49 = vld [vmem:[#allocation7 + $0x7f8] sm:$0xff]  }
 0x242   :  { %7355 = vmatpush3.bf16.msra.mxu0 %v8097_v54  ;;  %7364 = vmatprep.subr.bf16.mxu1 %v8102_v56  ;;  %v8135_v56 = vld [vmem:[#allocation7 + $0x800] sm:$0xff]  }
 0x243   :  { %7356 = vmatprep.subr.bf16.mxu0 %v8100_v57  ;;  %v8133_v57 = vld [vmem:[#allocation7 + $0x7b8] sm:$0xff]  }
 0x244   :  { %5459 = vmatmul.mubr.bf16.vlgmr.msra.gmra.mrb[24].mxu1 %v8784_v47  ;;  %v8116_v47 = vld [vmem:[#allocation7 + $0x7d8] sm:$0xff]  }
 0x245   :  { %7365 = vmatpush3.bf16.msra.mxu1 %v8103_v43  ;;  %5538 = vmatprep.mubr.bf16.mxu1 %v8866_v60  ;;  %v8117_v60 = vld [vmem:[#allocation7 + $0x798] sm:$0xff]   ;;  %v8138_v43 = vld [vmem:[#allocation7 + $0x848] sm:$0xff]  }
 0x246   :  { %7357 = vmatpush3.bf16.msra.mxu0 %v8101_v58  ;;  %7366 = vmatprep.subr.bf16.mxu1 %v8106_v59  ;;  %v8136_v58 = vld [vmem:[#allocation7 + $0x8c0] sm:$0xff]  }
 0x247   :  { %7386 = vmatprep.subr.bf16.mxu0 %v8104_v33  ;;  %v8139_v33 = vld [vmem:[#allocation7 + $0x808] sm:$0xff]   ;;  %v8137_v59 = vld [vmem:[#allocation7 + $0x880] sm:$0xff]  }
 0x249   :  { %5499 = vmatmul.mubr.bf16.vlgmr.msra.gmra.mrb[40].mxu0 %v1610_v1  ;;  %7367 = vmatpush3.bf16.msra.mxu1 %v8107_v39  ;;  %v1611_v39 = vcombine.high %v8860_v55, %v8860_v55  ;;  %v8143_v1 = vld [vmem:[#allocation7 + $0x810] sm:$0xff]  }
 0x24a   :  { %7387 = vmatpush3.bf16.msra.mxu0 %v8105_v48  ;;  %5578 = vmatprep.mubr.bf16.mxu0 %v1613_v53  ;;  %v8140_v48 = vld [vmem:[#allocation7 + $0x8c8] sm:$0xff]  }
 0x24b   :  { %7388 = vmatprep.subr.bf16.mxu0 %v8108_v41  ;;  %7368 = vmatprep.subr.bf16.mxu1 %v8110_v61  ;;  %v8142_v41 = vld [vmem:[#allocation7 + $0x850] sm:$0xff]   ;;  %v1661_v61 = vcombine.high %v8869_v62, %v8869_v62  ;;  %v8141_v53 = vld [vmem:[#allocation7 + $0x888] sm:$0xff]  }
 0x24d   :  { %7369 = vmatpush3.bf16.msra.mxu1 %v8111_v15  ;;  %v8146_v15 = vld [vmem:[#allocation7 + $0x858] sm:$0xff]  }
 0x24e   :  { %7389 = vmatpush3.bf16.msra.mxu0 %v8109_v2  ;;  %7370 = vmatprep.subr.bf16.mxu1 %v8114_v4  ;;  %v8144_v2 = vld [vmem:[#allocation7 + $0x8d0] sm:$0xff]   ;;  %v8150_v4 = vld [vmem:[#allocation7 + $0x860] sm:$0xff]  }
 0x24f   :  { %7390 = vmatprep.subr.bf16.mxu0 %v8112_v40  ;;  %v8147_v40 = vld [vmem:[#allocation7 + $0x818] sm:$0xff]  }
 0x251   :  { %7371 = vmatpush3.bf16.msra.mxu1 %v8115_v5  ;;  %v8148_v5 = vld [vmem:[#allocation7 + $0x8d8] sm:$0xff]  }
 0x252   :  { %7391 = vmatpush3.bf16.msra.mxu0 %v8113_v6  ;;  %7372 = vmatprep.subr.bf16.mxu1 %v8118_v8  ;;  %v8149_v6 = vld [vmem:[#allocation7 + $0x898] sm:$0xff]   ;;  %v8152_v8 = vld [vmem:[#allocation7 + $0x8e0] sm:$0xff]  }
 0x253   :  { %7392 = vmatprep.subr.bf16.mxu0 %v8116_v47  ;;  %v8154_v47 = vld [vmem:[#allocation7 + $0x868] sm:$0xff]  }
 0x255   :  { %7373 = vmatpush3.bf16.msra.mxu1 %v8119_v3  ;;  %v8155_v3 = vld [vmem:[#allocation7 + $0x828] sm:$0xff]  }
 0x256   :  { %7393 = vmatpush3.bf16.msra.mxu0 %v8117_v60  ;;  %7374 = vmatprep.subr.bf16.mxu1 %v8122_v13  ;;  %v8153_v60 = vld [vmem:[#allocation7 + $0x8a0] sm:$0xff]  }
 0x257   :  { %7394 = vmatprep.subr.bf16.mxu0 %v8120_v10  ;;  %v7072_v24 = vpop.f32.mrb[0].mxu1  ;;  %v8158_v10 = vld [vmem:[#allocation7 + $0x870] sm:$0xff]  }
 0x258   :  { %v7073_v28 = vpop.f32.mrb[1].mxu1 }
 0x259   :  { %v7074_v51 = vadd.f32 %v7073_v28, %v7072_v24  ;;  %7375 = vmatpush3.bf16.msra.mxu1 %v8123_v63  ;;  %v7075_v31 = vpop.f32.mrb[2].mxu1  ;;  %v8156_v63 = vld [vmem:[#allocation7 + $0x8e8] sm:$0xff]  }
 0x25a   :  { %7395 = vmatpush3.bf16.msra.mxu0 %v8121_v19  ;;  %v7076_v36 = vpop.f32.mrb[3].mxu1  ;;  %7376 = vmatprep.subr.bf16.mxu1 %v8126_v20 }
 0x25b   :  { %7396 = vmatprep.subr.bf16.mxu0 %v8124_v12  ;;  %v8159_v12 = vld [vmem:[#allocation7 + $0x830] sm:$0xff]  }
 0x25c   :  { %v7094_v38 = vpop.f32.mrb[16].mxu0 }
 0x25d   :  { %v7095_v22 = vpop.f32.mrb[17].mxu0  ;;  %7377 = vmatpush3.bf16.msra.mxu1 %v8127_v32  ;;  %v8160_v32 = vld [vmem:[#allocation7 + $0x8f0] sm:$0xff]  }
 0x25e   :  { %v7096_v45 = vadd.f32 %v7095_v22, %v7094_v38  ;;  %7397 = vmatpush3.bf16.msra.mxu0 %v8125_v30  ;;  %v7097_v37 = vpop.f32.mrb[18].mxu0  ;;  %7378 = vmatprep.subr.bf16.mxu1 %v8130_v34  ;;  %v8157_v30 = vld [vmem:[#allocation7 + $0x8a8] sm:$0xff]   ;;  %v8161_v22 = vld [vmem:[#allocation7 + $0x8b0] sm:$0xff]  }
 0x25f   :  { %v7098_v52 = vpop.f32.mrb[19].mxu0  ;;  %7398 = vmatprep.subr.bf16.mxu0 %v8128_v35  ;;  %v8163_v35 = vld [vmem:[#allocation7 + $0x838] sm:$0xff]  }
 0x260   :  { %v8951_v54 = vadd.f32 %v7096_v45, %v7074_v51  ;;  %v8162_v51 = vld [vmem:[#allocation7 + $0x878] sm:$0xff]   ;;  %v8167_v52 = vld [vmem:[#allocation7 + $0x900] sm:$0xff]  }
 0x261   :  { %7379 = vmatpush3.bf16.msra.mxu1 %v8131_v44  ;;  %v8166_v44 = vld [vmem:[#allocation7 + $0x940] sm:$0xff]   ;;  %v8164_v37 = vld [vmem:[#allocation7 + $0x8f8] sm:$0xff]  }
 0x262   :  { %7399 = vmatpush3.bf16.msra.mxu0 %v8129_v42  ;;  %7408 = vmatprep.subr.bf16.mxu1 %v8134_v29 }
 0x263   :  { %7400 = vmatprep.subr.bf16.mxu0 %v8132_v49  ;;  %v8165_v49 = vld [vmem:[#allocation7 + $0x8b8] sm:$0xff]  }
 0x264   :  { %5539 = vmatmul.mubr.bf16.vlgmr.msra.gmra.mrb[28].mxu1 %v8860_v55  ;;  %v8145_v55 = vld [vmem:[#allocation7 + $0x890] sm:$0xff]  }
 0x265   :  { %7409 = vmatpush3.bf16.msra.mxu1 %v8135_v56  ;;  %5618 = vmatprep.mubr.bf16.mxu1 %v8869_v62  ;;  %v8151_v62 = vld [vmem:[#allocation7 + $0x820] sm:$0xff]  }
 0x266   :  { %7401 = vmatpush3.bf16.msra.mxu0 %v8133_v57  ;;  %7410 = vmatprep.subr.bf16.mxu1 %v8138_v43  ;;  %v8168_v56 = vld [vmem:[#allocation7 + $0x9c0] sm:$0xff]   ;;  %v8171_v57 = vld [vmem:[#allocation7 + $0x908] sm:$0xff]  }
 0x267   :  { %7430 = vmatprep.subr.bf16.mxu0 %v8136_v58  ;;  %v8169_v43 = vld [vmem:[#allocation7 + $0x980] sm:$0xff]   ;;  %v1659_v58 = vcombine.high %v8820_v21, %v8820_v21 }
 0x269   :  { %5579 = vmatmul.mubr.bf16.vlgmr.msra.gmra.mrb[44].mxu0 %v1611_v39  ;;  %7411 = vmatpush3.bf16.msra.mxu1 %v8139_v33  ;;  %v8172_v33 = vld [vmem:[#allocation7 + $0x9c8] sm:$0xff]   ;;  %v1662_v39 = vcombine.high %v8875_v0, %v8875_v0 }
 0x26a   :  { %7431 = vmatpush3.bf16.msra.mxu0 %v8137_v59  ;;  %5658 = vmatprep.mubr.bf16.mxu0 %v1661_v61  ;;  %v8174_v59 = vld [vmem:[#allocation7 + $0x950] sm:$0xff]   ;;  %v8178_v61 = vld [vmem:[#allocation7 + $0x958] sm:$0xff]  }
 0x26b   :  { %7432 = vmatprep.subr.bf16.mxu0 %v8140_v48  ;;  %7412 = vmatprep.subr.bf16.mxu1 %v8142_v41  ;;  %v8175_v48 = vld [vmem:[#allocation7 + $0x910] sm:$0xff]   ;;  %v8173_v41 = vld [vmem:[#allocation7 + $0x988] sm:$0xff]  }
 0x26d   :  { %7413 = vmatpush3.bf16.msra.mxu1 %v8143_v1  ;;  %v8176_v1 = vld [vmem:[#allocation7 + $0x9d0] sm:$0xff]  }
 0x26e   :  { %7433 = vmatpush3.bf16.msra.mxu0 %v8141_v53  ;;  %7414 = vmatprep.subr.bf16.mxu1 %v8146_v15  ;;  %v8179_v53 = vld [vmem:[#allocation7 + $0x918] sm:$0xff]   ;;  %v8182_v15 = vld [vmem:[#allocation7 + $0x960] sm:$0xff]  }
 0x26f   :  { %7434 = vmatprep.subr.bf16.mxu0 %v8144_v2  ;;  %v8180_v2 = vld [vmem:[#allocation7 + $0x9d8] sm:$0xff]  }
 0x271   :  { %7415 = vmatpush3.bf16.msra.mxu1 %v8147_v40  ;;  %v8181_v40 = vld [vmem:[#allocation7 + $0x998] sm:$0xff]  }
 0x272   :  { %7435 = vmatpush3.bf16.msra.mxu0 %v8145_v55  ;;  %7416 = vmatprep.subr.bf16.mxu1 %v8150_v4  ;;  %v8186_v55 = vld [vmem:[#allocation7 + $0x968] sm:$0xff]   ;;  %v8184_v4 = vld [vmem:[#allocation7 + $0x9e0] sm:$0xff]  }
 0x273   :  { %7436 = vmatprep.subr.bf16.mxu0 %v8148_v5  ;;  %v8187_v5 = vld [vmem:[#allocation7 + $0x928] sm:$0xff]  }
 0x275   :  { %7417 = vmatpush3.bf16.msra.mxu1 %v8151_v62  ;;  %v8185_v62 = vld [vmem:[#allocation7 + $0x9a0] sm:$0xff]  }
 0x276   :  { %7437 = vmatpush3.bf16.msra.mxu0 %v8149_v6  ;;  %7418 = vmatprep.subr.bf16.mxu1 %v8154_v47  ;;  %v8190_v6 = vld [vmem:[#allocation7 + $0x970] sm:$0xff]  }
 0x277   :  { %7438 = vmatprep.subr.bf16.mxu0 %v8152_v8  ;;  %v7116_v13 = vpop.f32.mrb[4].mxu1  ;;  %v8188_v8 = vld [vmem:[#allocation7 + $0x9e8] sm:$0xff]  }
 0x278   :  { %v7117_v19 = vpop.f32.mrb[5].mxu1 }
 0x279   :  { %v7118_v20 = vadd.f32 %v7117_v19, %v7116_v13  ;;  %v7119_v24 = vpop.f32.mrb[6].mxu1  ;;  %7419 = vmatpush3.bf16.msra.mxu1 %v8155_v3  ;;  %v8191_v13 = vld [vmem:[#allocation7 + $0x930] sm:$0xff]   ;;  %v8189_v19 = vld [vmem:[#allocation7 + $0x9a8] sm:$0xff]  }
 0x27a   :  { %7439 = vmatpush3.bf16.msra.mxu0 %v8153_v60  ;;  %v7120_v28 = vpop.f32.mrb[7].mxu1  ;;  %7420 = vmatprep.subr.bf16.mxu1 %v8158_v10 }
 0x27b   :  { %v5061_v31 = vadd.f32 %v7118_v20, %v8951_v54  ;;  %7440 = vmatprep.subr.bf16.mxu0 %v8156_v63  ;;  %v8170_v54 = vld [vmem:[#allocation7 + $0x948] sm:$0xff]   ;;  %v8194_v20 = vld [vmem:[#allocation7 + $0x978] sm:$0xff]  }
 0x27c   :  { %v7138_v36 = vpop.f32.mrb[20].mxu0 }
 0x27d   :  { %v7139_v34 = vpop.f32.mrb[21].mxu0  ;;  %7421 = vmatpush3.bf16.msra.mxu1 %v8159_v12  ;;  %v8192_v12 = vld [vmem:[#allocation7 + $0x9f0] sm:$0xff]  }
 0x27e   :  { %v7140_v38 = vadd.f32 %v7139_v34, %v7138_v36  ;;  %v7141_v42 = vpop.f32.mrb[22].mxu0  ;;  %7441 = vmatpush3.bf16.msra.mxu0 %v8157_v30  ;;  %7422 = vmatprep.subr.bf16.mxu1 %v8162_v51  ;;  %v8195_v51 = vld [vmem:[#allocation7 + $0x938] sm:$0xff]   ;;  %v8193_v36 = vld [vmem:[#allocation7 + $0x9b0] sm:$0xff]   ;;  %v8198_v34 = vld [vmem:[#allocation7 + $0xa40] sm:$0xff]  }
 0x27f   :  { %v7142_v45 = vpop.f32.mrb[23].mxu0  ;;  %7442 = vmatprep.subr.bf16.mxu0 %v8160_v32 }
 0x280   :  { %v8960_v29 = vadd.f32 %v7140_v38, %v5061_v31  ;;  %v8196_v38 = vld [vmem:[#allocation7 + $0x9f8] sm:$0xff]   ;;  %v8202_v45 = vld [vmem:[#allocation7 + $0xa48] sm:$0xff]  }
 0x281   :  { %7423 = vmatpush3.bf16.msra.mxu1 %v8163_v35 }
 0x282   :  { %7443 = vmatpush3.bf16.msra.mxu0 %v8161_v22  ;;  %7452 = vmatprep.subr.bf16.mxu1 %v8166_v44  ;;  %v8199_v22 = vld [vmem:[#allocation7 + $0xa00] sm:$0xff]   ;;  %v8197_v44 = vld [vmem:[#allocation7 + $0x9b8] sm:$0xff]  }
 0x283   :  { %7444 = vmatprep.subr.bf16.mxu0 %v8164_v37  ;;  %v8200_v37 = vld [vmem:[#allocation7 + $0xac0] sm:$0xff]  }
 0x284   :  { %5619 = vmatmul.mubr.bf16.vlgmr.msra.gmra.mrb[32].mxu1 %v8820_v21  ;;  %v8177_v21 = vld [vmem:[#allocation7 + $0x990] sm:$0xff]  }
 0x285   :  { %7453 = vmatpush3.bf16.msra.mxu1 %v8167_v52  ;;  %5698 = vmatprep.mubr.bf16.mxu1 %v8875_v0  ;;  %v8183_v0 = vld [vmem:[#allocation7 + $0x920] sm:$0xff]  }
 0x286   :  { %7445 = vmatpush3.bf16.msra.mxu0 %v8165_v49  ;;  %7454 = vmatprep.subr.bf16.mxu1 %v8170_v54  ;;  %v8201_v52 = vld [vmem:[#allocation7 + $0xa80] sm:$0xff]   ;;  %v1660_v49 = vcombine.high %v8872_v46, %v8872_v46  ;;  %v8204_v54 = vld [vmem:[#allocation7 + $0xac8] sm:$0xff]  }
 0x287   :  { %7474 = vmatprep.subr.bf16.mxu0 %v8168_v56  ;;  %v8206_v56 = vld [vmem:[#allocation7 + $0xa50] sm:$0xff]  }
 0x289   :  { %5659 = vmatmul.mubr.bf16.vlgmr.msra.gmra.mrb[48].mxu0 %v1659_v58  ;;  %7455 = vmatpush3.bf16.msra.mxu1 %v8171_v57  ;;  %v1710_v57 = vcombine.high %v8880_v50, %v8880_v50  ;;  %v8205_v58 = vld [vmem:[#allocation7 + $0xa88] sm:$0xff]  }
 0x28a   :  { %7475 = vmatpush3.bf16.msra.mxu0 %v8169_v43  ;;  %5738 = vmatprep.mubr.bf16.mxu0 %v1662_v39  ;;  %v8207_v43 = vld [vmem:[#allocation7 + $0xa10] sm:$0xff]   ;;  %v8211_v39 = vld [vmem:[#allocation7 + $0xa18] sm:$0xff]  }
 0x28b   :  { %7476 = vmatprep.subr.bf16.mxu0 %v8172_v33  ;;  %7456 = vmatprep.subr.bf16.mxu1 %v8174_v59  ;;  %v8210_v33 = vld [vmem:[#allocation7 + $0xa58] sm:$0xff]   ;;  %v8208_v59 = vld [vmem:[#allocation7 + $0xad0] sm:$0xff]  }
 0x28d   :  { %7457 = vmatpush3.bf16.msra.mxu1 %v8175_v48  ;;  %v8214_v48 = vld [vmem:[#allocation7 + $0xa60] sm:$0xff]  }
 0x28e   :  { %7477 = vmatpush3.bf16.msra.mxu0 %v8173_v41  ;;  %7458 = vmatprep.subr.bf16.mxu1 %v8178_v61  ;;  %v8212_v41 = vld [vmem:[#allocation7 + $0xad8] sm:$0xff]  }
 0x28f   :  { %7478 = vmatprep.subr.bf16.mxu0 %v8176_v1  ;;  %v8213_v61 = vld [vmem:[#allocation7 + $0xa98] sm:$0xff]   ;;  %v8218_v1 = vld [vmem:[#allocation7 + $0xa68] sm:$0xff]  }
 0x291   :  { %7459 = vmatpush3.bf16.msra.mxu1 %v8179_v53  ;;  %v8216_v53 = vld [vmem:[#allocation7 + $0xae0] sm:$0xff]  }
 0x292   :  { %7479 = vmatpush3.bf16.msra.mxu0 %v8177_v21  ;;  %7460 = vmatprep.subr.bf16.mxu1 %v8182_v15  ;;  %v8219_v21 = vld [vmem:[#allocation7 + $0xa28] sm:$0xff]   ;;  %v8217_v15 = vld [vmem:[#allocation7 + $0xaa0] sm:$0xff]  }
 0x293   :  { %7480 = vmatprep.subr.bf16.mxu0 %v8180_v2  ;;  %v8222_v2 = vld [vmem:[#allocation7 + $0xa70] sm:$0xff]  }
 0x295   :  { %7461 = vmatpush3.bf16.msra.mxu1 %v8183_v0 }
 0x296   :  { %7481 = vmatpush3.bf16.msra.mxu0 %v8181_v40  ;;  %7462 = vmatprep.subr.bf16.mxu1 %v8186_v55  ;;  %v8220_v40 = vld [vmem:[#allocation7 + $0xae8] sm:$0xff]  }
 0x297   :  { %7482 = vmatprep.subr.bf16.mxu0 %v8184_v4  ;;  %v7160_v47 = vpop.f32.mrb[8].mxu1 }
 0x298   :  { %v7161_v3 = vpop.f32.mrb[9].mxu1 }
 0x299   :  { %v7162_v60 = vadd.f32 %v7161_v3, %v7160_v47  ;;  %v7163_v10 = vpop.f32.mrb[10].mxu1  ;;  %7463 = vmatpush3.bf16.msra.mxu1 %v8187_v5  ;;  %v8221_v47 = vld [vmem:[#allocation7 + $0xaa8] sm:$0xff]  }
 0x29a   :  { %7483 = vmatpush3.bf16.msra.mxu0 %v8185_v62  ;;  %v7164_v63 = vpop.f32.mrb[11].mxu1  ;;  %7464 = vmatprep.subr.bf16.mxu1 %v8190_v6  ;;  %v8223_v62 = vld [vmem:[#allocation7 + $0xa30] sm:$0xff]  }
 0x29b   :  { %v5141_v24 = vadd.f32 %v7162_v60, %v8960_v29  ;;  %7484 = vmatprep.subr.bf16.mxu0 %v8188_v8  ;;  %v8203_v29 = vld [vmem:[#allocation7 + $0xa08] sm:$0xff]   ;;  %v8226_v8 = vld [vmem:[#allocation7 + $0xa78] sm:$0xff]   ;;  %v8224_v60 = vld [vmem:[#allocation7 + $0xaf0] sm:$0xff]  }
 0x29c   :  { %v7182_v28 = vpop.f32.mrb[24].mxu0  ;;  %v8227_v63 = vld [vmem:[#allocation7 + $0xa38] sm:$0xff]  }
 0x29d   :  { %v7183_v30 = vpop.f32.mrb[25].mxu0  ;;  %7465 = vmatpush3.bf16.msra.mxu1 %v8191_v13 }
 0x29e   :  { %v7184_v31 = vadd.f32 %v7183_v30, %v7182_v28  ;;  %v7185_v32 = vpop.f32.mrb[26].mxu0  ;;  %7485 = vmatpush3.bf16.msra.mxu0 %v8189_v19  ;;  %7466 = vmatprep.subr.bf16.mxu1 %v8194_v20  ;;  %v8228_v30 = vld [vmem:[#allocation7 + $0xaf8] sm:$0xff]  }
 0x29f   :  { %v7186_v35 = vpop.f32.mrb[27].mxu0  ;;  %7486 = vmatprep.subr.bf16.mxu0 %v8192_v12  ;;  %v8230_v12 = vld [vmem:[#allocation7 + $0xb40] sm:$0xff]   ;;  %v8229_v32 = vld [vmem:[#allocation7 + $0xab8] sm:$0xff]  }
 0x2a0   :  { %v8969_v42 = vadd.f32 %v7184_v31, %v5141_v24  ;;  %v8225_v24 = vld [vmem:[#allocation7 + $0xab0] sm:$0xff]   ;;  %v8231_v31 = vld [vmem:[#allocation7 + $0xb00] sm:$0xff]   ;;  %v8235_v35 = vld [vmem:[#allocation7 + $0xb08] sm:$0xff]  }
 0x2a1   :  { %7467 = vmatpush3.bf16.msra.mxu1 %v8195_v51 }
 0x2a2   :  { %7487 = vmatpush3.bf16.msra.mxu0 %v8193_v36  ;;  %7496 = vmatprep.subr.bf16.mxu1 %v8198_v34  ;;  %v8234_v36 = vld [vmem:[#allocation7 + $0xb48] sm:$0xff]   ;;  %v8232_v34 = vld [vmem:[#allocation7 + $0xbc0] sm:$0xff]  }
 0x2a3   :  { %7488 = vmatprep.subr.bf16.mxu0 %v8196_v38  ;;  %v8233_v38 = vld [vmem:[#allocation7 + $0xb80] sm:$0xff]  }
 0x2a4   :  { %5699 = vmatmul.mubr.bf16.vlgmr.msra.gmra.mrb[36].mxu1 %v8872_v46  ;;  %v8209_v46 = vld [vmem:[#allocation7 + $0xa90] sm:$0xff]  }
 0x2a5   :  { %7497 = vmatpush3.bf16.msra.mxu1 %v8199_v22  ;;  %5778 = vmatprep.mubr.bf16.mxu1 %v8880_v50  ;;  %v8215_v50 = vld [vmem:[#allocation7 + $0xa20] sm:$0xff]   ;;  %v8236_v22 = vld [vmem:[#allocation7 + $0xbc8] sm:$0xff]  }
 0x2a6   :  { %7489 = vmatpush3.bf16.msra.mxu0 %v8197_v44  ;;  %7498 = vmatprep.subr.bf16.mxu1 %v8202_v45  ;;  %v8238_v44 = vld [vmem:[#allocation7 + $0xb50] sm:$0xff]   ;;  %v1711_v45 = vcombine.high %v8886_v9, %v8886_v9 }
 0x2a7   :  { %7518 = vmatprep.subr.bf16.mxu0 %v8200_v37  ;;  %v8239_v37 = vld [vmem:[#allocation7 + $0xb10] sm:$0xff]  }
 0x2a9   :  { %5739 = vmatmul.mubr.bf16.vlgmr.msra.gmra.mrb[52].mxu0 %v1660_v49  ;;  %7499 = vmatpush3.bf16.msra.mxu1 %v8203_v29  ;;  %v8237_v29 = vld [vmem:[#allocation7 + $0xb88] sm:$0xff]   ;;  %v8240_v49 = vld [vmem:[#allocation7 + $0xbd0] sm:$0xff]  }
 0x2aa   :  { %7519 = vmatpush3.bf16.msra.mxu0 %v8201_v52  ;;  %5818 = vmatprep.mubr.bf16.mxu0 %v1710_v57  ;;  %v8242_v52 = vld [vmem:[#allocation7 + $0xb58] sm:$0xff]  }
 0x2ab   :  { %7520 = vmatprep.subr.bf16.mxu0 %v8204_v54  ;;  %7500 = vmatprep.subr.bf16.mxu1 %v8206_v56  ;;  %v8243_v54 = vld [vmem:[#allocation7 + $0xb18] sm:$0xff]   ;;  %v8246_v56 = vld [vmem:[#allocation7 + $0xb60] sm:$0xff]  }
 0x2ac   :  { %v8244_v57 = vld [vmem:[#allocation7 + $0xbd8] sm:$0xff]  }
 0x2ad   :  { %7501 = vmatpush3.bf16.msra.mxu1 %v8207_v43  ;;  %v8245_v43 = vld [vmem:[#allocation7 + $0xb98] sm:$0xff]  }
 0x2ae   :  { %7521 = vmatpush3.bf16.msra.mxu0 %v8205_v58  ;;  %7502 = vmatprep.subr.bf16.mxu1 %v8210_v33  ;;  %v8250_v58 = vld [vmem:[#allocation7 + $0xb68] sm:$0xff]   ;;  %v8248_v33 = vld [vmem:[#allocation7 + $0xbe0] sm:$0xff]  }
 0x2af   :  { %7522 = vmatprep.subr.bf16.mxu0 %v8208_v59  ;;  %v8251_v59 = vld [vmem:[#allocation7 + $0xb28] sm:$0xff]  }
 0x2b1   :  { %7503 = vmatpush3.bf16.msra.mxu1 %v8211_v39  ;;  %v8249_v39 = vld [vmem:[#allocation7 + $0xba0] sm:$0xff]  }
 0x2b2   :  { %7523 = vmatpush3.bf16.msra.mxu0 %v8209_v46  ;;  %7504 = vmatprep.subr.bf16.mxu1 %v8214_v48  ;;  %v8254_v46 = vld [vmem:[#allocation7 + $0xb70] sm:$0xff]  }
 0x2b3   :  { %7524 = vmatprep.subr.bf16.mxu0 %v8212_v41  ;;  %v8252_v41 = vld [vmem:[#allocation7 + $0xbe8] sm:$0xff]  }
 0x2b5   :  { %7505 = vmatpush3.bf16.msra.mxu1 %v8215_v50 }
 0x2b6   :  { %7525 = vmatpush3.bf16.msra.mxu0 %v8213_v61  ;;  %7506 = vmatprep.subr.bf16.mxu1 %v8218_v1 }
 0x2b7   :  { %7526 = vmatprep.subr.bf16.mxu0 %v8216_v53  ;;  %v7204_v0 = vpop.f32.mrb[12].mxu1  ;;  %v8255_v53 = vld [vmem:[#allocation7 + $0xb30] sm:$0xff]  }
 0x2b8   :  { %v7205_v55 = vpop.f32.mrb[13].mxu1 }
 0x2b9   :  { %v7206_v4 = vadd.f32 %v7205_v55, %v7204_v0  ;;  %v7207_v5 = vpop.f32.mrb[14].mxu1  ;;  %7507 = vmatpush3.bf16.msra.mxu1 %v8219_v21 }
 0x2ba   :  { %7527 = vmatpush3.bf16.msra.mxu0 %v8217_v15  ;;  %v7208_v6 = vpop.f32.mrb[15].mxu1  ;;  %7508 = vmatprep.subr.bf16.mxu1 %v8222_v2  ;;  %v8253_v15 = vld [vmem:[#allocation7 + $0xba8] sm:$0xff]   ;;  %v8258_v2 = vld [vmem:[#allocation7 + $0xb78] sm:$0xff]  }
 0x2bb   :  { %v5221_v3 = vadd.f32 %v7206_v4, %v8969_v42  ;;  %7528 = vmatprep.subr.bf16.mxu0 %v8220_v40  ;;  %v1708_v42 = vcombine.high %v8832_v25, %v8832_v25  ;;  %v8256_v40 = vld [vmem:[#allocation7 + $0xbf0] sm:$0xff]   ;;  %v8259_v5 = vld [vmem:[#allocation7 + $0xb38] sm:$0xff]  }
 0x2bc   :  { %v7226_v10 = vpop.f32.mrb[28].mxu0 }
 0x2bd   :  { %v7227_v13 = vpop.f32.mrb[29].mxu0  ;;  %7509 = vmatpush3.bf16.msra.mxu1 %v8223_v62 }
 0x2be   :  { %v7228_v19 = vadd.f32 %v7227_v13, %v7226_v10  ;;  %v7229_v20 = vpop.f32.mrb[30].mxu0  ;;  %7529 = vmatpush3.bf16.msra.mxu0 %v8221_v47  ;;  %7510 = vmatprep.subr.bf16.mxu1 %v8226_v8  ;;  %v8257_v47 = vld [vmem:[#allocation7 + $0xbb0] sm:$0xff]   ;;  %v8262_v8 = vld [vmem:[#allocation7 + $0xc40] sm:$0xff]  }
 0x2bf   :  { %v7230_v28 = vpop.f32.mrb[31].mxu0  ;;  %7530 = vmatprep.subr.bf16.mxu0 %v8224_v60  ;;  %v8260_v60 = vld [vmem:[#allocation7 + $0xbf8] sm:$0xff]   ;;  %v8263_v13 = vld [vmem:[#allocation7 + $0xc00] sm:$0xff]  }
 0x2c0   :  { %v8978_v51 = vadd.f32 %v7228_v19, %v5221_v3  ;;  %v8266_v19 = vld [vmem:[#allocation7 + $0xc48] sm:$0xff]   ;;  %v8264_v20 = vld [vmem:[#allocation7 + $0xcc0] sm:$0xff]   ;;  %v1709_v28 = vcombine.high %v8883_v7, %v8883_v7 }
 0x2c1   :  { %7511 = vmatpush3.bf16.msra.mxu1 %v8227_v63  ;;  %v8261_v63 = vld [vmem:[#allocation7 + $0xbb8] sm:$0xff]  }
 0x2c2   :  { %7531 = vmatpush3.bf16.msra.mxu0 %v8225_v24  ;;  %7540 = vmatprep.subr.bf16.mxu1 %v8230_v12  ;;  %v8267_v24 = vld [vmem:[#allocation7 + $0xc08] sm:$0xff]   ;;  %v8265_v12 = vld [vmem:[#allocation7 + $0xc80] sm:$0xff]  }
 0x2c3   :  { %7532 = vmatprep.subr.bf16.mxu0 %v8228_v30  ;;  %v8268_v30 = vld [vmem:[#allocation7 + $0xcc8] sm:$0xff]  }
 0x2c4   :  { %5779 = vmatmul.mubr.bf16.vlgmr.msra.gmra.mrb[40].mxu1 %v8832_v25  ;;  %v8241_v25 = vld [vmem:[#allocation7 + $0xb90] sm:$0xff]  }
 0x2c5   :  { %7541 = vmatpush3.bf16.msra.mxu1 %v8231_v31  ;;  %5858 = vmatprep.mubr.bf16.mxu1 %v8886_v9  ;;  %v8247_v9 = vld [vmem:[#allocation7 + $0xb20] sm:$0xff]   ;;  %v1759_v31 = vcombine.high %v8899_v17, %v8899_v17 }
 0x2c6   :  { %7533 = vmatpush3.bf16.msra.mxu0 %v8229_v32  ;;  %7542 = vmatprep.subr.bf16.mxu1 %v8234_v36  ;;  %v8271_v32 = vld [vmem:[#allocation7 + $0xc10] sm:$0xff]   ;;  %v8269_v36 = vld [vmem:[#allocation7 + $0xc88] sm:$0xff]  }
 0x2c7   :  { %7562 = vmatprep.subr.bf16.mxu0 %v8232_v34  ;;  %v8274_v34 = vld [vmem:[#allocation7 + $0xc58] sm:$0xff]  }
 0x2c9   :  { %5819 = vmatmul.mubr.bf16.vlgmr.msra.gmra.mrb[56].mxu0 %v1708_v42  ;;  %7543 = vmatpush3.bf16.msra.mxu1 %v8235_v35  ;;  %v8272_v35 = vld [vmem:[#allocation7 + $0xcd0] sm:$0xff]   ;;  %v8278_v42 = vld [vmem:[#allocation7 + $0xc60] sm:$0xff]  }
 0x2ca   :  { %7563 = vmatpush3.bf16.msra.mxu0 %v8233_v38  ;;  %5898 = vmatprep.mubr.bf16.mxu0 %v1711_v45  ;;  %v8275_v38 = vld [vmem:[#allocation7 + $0xc18] sm:$0xff]   ;;  %v8282_v45 = vld [vmem:[#allocation7 + $0xc68] sm:$0xff]  }
 0x2cb   :  { %7564 = vmatprep.subr.bf16.mxu0 %v8236_v22  ;;  %7544 = vmatprep.subr.bf16.mxu1 %v8238_v44  ;;  %v8276_v22 = vld [vmem:[#allocation7 + $0xcd8] sm:$0xff]  }
 0x2cc   :  { %v8277_v44 = vld [vmem:[#allocation7 + $0xc98] sm:$0xff]  }
 0x2cd   :  { %7545 = vmatpush3.bf16.msra.mxu1 %v8239_v37  ;;  %v8280_v37 = vld [vmem:[#allocation7 + $0xce0] sm:$0xff]  }
 0x2ce   :  { %7565 = vmatpush3.bf16.msra.mxu0 %v8237_v29  ;;  %7546 = vmatprep.subr.bf16.mxu1 %v8242_v52  ;;  %v8283_v29 = vld [vmem:[#allocation7 + $0xc28] sm:$0xff]   ;;  %v8281_v52 = vld [vmem:[#allocation7 + $0xca0] sm:$0xff]  }
 0x2cf   :  { %7566 = vmatprep.subr.bf16.mxu0 %v8240_v49  ;;  %v8286_v49 = vld [vmem:[#allocation7 + $0xc70] sm:$0xff]  }
 0x2d1   :  { %7547 = vmatpush3.bf16.msra.mxu1 %v8243_v54 }
 0x2d2   :  { %7567 = vmatpush3.bf16.msra.mxu0 %v8241_v25  ;;  %7548 = vmatprep.subr.bf16.mxu1 %v8246_v56  ;;  %v8284_v25 = vld [vmem:[#allocation7 + $0xce8] sm:$0xff]  }
 0x2d3   :  { %7568 = vmatprep.subr.bf16.mxu0 %v8244_v57 }
 0x2d5   :  { %7549 = vmatpush3.bf16.msra.mxu1 %v8247_v9 }
 0x2d6   :  { %7569 = vmatpush3.bf16.msra.mxu0 %v8245_v43  ;;  %7550 = vmatprep.subr.bf16.mxu1 %v8250_v58  ;;  %v8287_v43 = vld [vmem:[#allocation7 + $0xc30] sm:$0xff]  }
 0x2d7   :  { %7570 = vmatprep.subr.bf16.mxu0 %v8248_v33  ;;  %v7248_v48 = vpop.f32.mrb[16].mxu1  ;;  %v8285_v33 = vld [vmem:[#allocation7 + $0xca8] sm:$0xff]  }
 0x2d8   :  { %v7249_v50 = vpop.f32.mrb[17].mxu1 }
 0x2d9   :  { %v7250_v61 = vadd.f32 %v7249_v50, %v7248_v48  ;;  %v7251_v1 = vpop.f32.mrb[18].mxu1  ;;  %7551 = vmatpush3.bf16.msra.mxu1 %v8251_v59  ;;  %v8290_v59 = vld [vmem:[#allocation7 + $0xc78] sm:$0xff]  }
 0x2da   :  { %7571 = vmatpush3.bf16.msra.mxu0 %v8249_v39  ;;  %v7252_v21 = vpop.f32.mrb[19].mxu1  ;;  %7552 = vmatprep.subr.bf16.mxu1 %v8254_v46  ;;  %v8288_v46 = vld [vmem:[#allocation7 + $0xcf0] sm:$0xff]   ;;  %v8291_v50 = vld [vmem:[#allocation7 + $0xc38] sm:$0xff]  }
 0x2db   :  { %v5301_v0 = vadd.f32 %v7250_v61, %v8978_v51  ;;  %7572 = vmatprep.subr.bf16.mxu0 %v8252_v41  ;;  %v8270_v51 = vld [vmem:[#allocation7 + $0xc50] sm:$0xff]   ;;  %v8294_v21 = vld [vmem:[#allocation7 + $0xd40] sm:$0xff]  }
 0x2dc   :  { %v7270_v55 = vpop.f32.mrb[32].mxu0 }
 0x2dd   :  { %v7271_v4 = vpop.f32.mrb[33].mxu0  ;;  %7553 = vmatpush3.bf16.msra.mxu1 %v8255_v53  ;;  %v8289_v53 = vld [vmem:[#allocation7 + $0xcb0] sm:$0xff]  }
 0x2de   :  { %v7272_v62 = vadd.f32 %v7271_v4, %v7270_v55  ;;  %v7273_v6 = vpop.f32.mrb[34].mxu0  ;;  %7573 = vmatpush3.bf16.msra.mxu0 %v8253_v15  ;;  %7554 = vmatprep.subr.bf16.mxu1 %v8258_v2  ;;  %v8292_v2 = vld [vmem:[#allocation7 + $0xcf8] sm:$0xff]   ;;  %v8298_v4 = vld [vmem:[#allocation7 + $0xd48] sm:$0xff]  }
 0x2df   :  { %v7274_v3 = vpop.f32.mrb[35].mxu0  ;;  %7574 = vmatprep.subr.bf16.mxu0 %v8256_v40  ;;  %v8295_v40 = vld [vmem:[#allocation7 + $0xd00] sm:$0xff]   ;;  %v8293_v55 = vld [vmem:[#allocation7 + $0xcb8] sm:$0xff]  }
 0x2e0   :  { %v8987_v10 = vadd.f32 %v7272_v62, %v5301_v0  ;;  %v8299_v62 = vld [vmem:[#allocation7 + $0xd08] sm:$0xff]   ;;  %v8297_v6 = vld [vmem:[#allocation7 + $0xd80] sm:$0xff]   ;;  %v8302_v3 = vld [vmem:[#allocation7 + $0xd50] sm:$0xff]  }
 0x2e1   :  { %7555 = vmatpush3.bf16.msra.mxu1 %v8259_v5  ;;  %v8296_v5 = vld [vmem:[#allocation7 + $0xdc0] sm:$0xff]  }
 0x2e2   :  { %7575 = vmatpush3.bf16.msra.mxu0 %v8257_v47  ;;  %7584 = vmatprep.subr.bf16.mxu1 %v8262_v8  ;;  %v1757_v47 = vcombine.high %v8813_v16, %v8813_v16  ;;  %v8300_v8 = vld [vmem:[#allocation7 + $0xdc8] sm:$0xff]  }
 0x2e3   :  { %7576 = vmatprep.subr.bf16.mxu0 %v8260_v60  ;;  %v1760_v60 = vcombine.high %v8902_v18, %v8902_v18 }
 0x2e4   :  { %5859 = vmatmul.mubr.bf16.vlgmr.msra.gmra.mrb[44].mxu1 %v8883_v7  ;;  %v8273_v7 = vld [vmem:[#allocation7 + $0xc90] sm:$0xff]  }
 0x2e5   :  { %7585 = vmatpush3.bf16.msra.mxu1 %v8263_v13  ;;  %5938 = vmatprep.mubr.bf16.mxu1 %v8899_v17  ;;  %v8279_v17 = vld [vmem:[#allocation7 + $0xc20] sm:$0xff]   ;;  %v8301_v13 = vld [vmem:[#allocation7 + $0xd88] sm:$0xff]  }
 0x2e6   :  { %7577 = vmatpush3.bf16.msra.mxu0 %v8261_v63  ;;  %7586 = vmatprep.subr.bf16.mxu1 %v8266_v19  ;;  %v8306_v63 = vld [vmem:[#allocation7 + $0xd58] sm:$0xff]   ;;  %v8304_v19 = vld [vmem:[#allocation7 + $0xdd0] sm:$0xff]  }
 0x2e7   :  { %7606 = vmatprep.subr.bf16.mxu0 %v8264_v20  ;;  %v8307_v20 = vld [vmem:[#allocation7 + $0xd18] sm:$0xff]  }
 0x2e9   :  { %5899 = vmatmul.mubr.bf16.vlgmr.msra.gmra.mrb[60].mxu0 %v1709_v28  ;;  %7587 = vmatpush3.bf16.msra.mxu1 %v8267_v24  ;;  %v8310_v24 = vld [vmem:[#allocation7 + $0xd60] sm:$0xff]   ;;  %v8309_v28 = vld [vmem:[#allocation7 + $0xd98] sm:$0xff]  }
 0x2ea   :  { %7607 = vmatpush3.bf16.msra.mxu0 %v8265_v12  ;;  %5978 = vmatprep.mubr.bf16.mxu0 %v1759_v31  ;;  %v8308_v12 = vld [vmem:[#allocation7 + $0xdd8] sm:$0xff]   ;;  %v8315_v31 = vld [vmem:[#allocation7 + $0xd28] sm:$0xff]  }
 0x2eb   :  { %7608 = vmatprep.subr.bf16.mxu0 %v8268_v30  ;;  %7588 = vmatprep.subr.bf16.mxu1 %v8270_v51  ;;  %v8314_v30 = vld [vmem:[#allocation7 + $0xd68] sm:$0xff]   ;;  %v8312_v51 = vld [vmem:[#allocation7 + $0xde0] sm:$0xff]  }
 0x2ed   :  { %7589 = vmatpush3.bf16.msra.mxu1 %v8271_v32  ;;  %v8313_v32 = vld [vmem:[#allocation7 + $0xda0] sm:$0xff]  }
 0x2ee   :  { %7609 = vmatpush3.bf16.msra.mxu0 %v8269_v36  ;;  %7590 = vmatprep.subr.bf16.mxu1 %v8274_v34  ;;  %v8318_v36 = vld [vmem:[#allocation7 + $0xd70] sm:$0xff]  }
 0x2ef   :  { %7610 = vmatprep.subr.bf16.mxu0 %v8272_v35  ;;  %v8316_v35 = vld [vmem:[#allocation7 + $0xde8] sm:$0xff]  }
 0x2f1   :  { %7591 = vmatpush3.bf16.msra.mxu1 %v8275_v38 }
 0x2f2   :  { %7611 = vmatpush3.bf16.msra.mxu0 %v8273_v7  ;;  %7592 = vmatprep.subr.bf16.mxu1 %v8278_v42 }
 0x2f3   :  { %7612 = vmatprep.subr.bf16.mxu0 %v8276_v22  ;;  %v8319_v22 = vld [vmem:[#allocation7 + $0xd30] sm:$0xff]  }
 0x2f5   :  { %7593 = vmatpush3.bf16.msra.mxu1 %v8279_v17 }
 0x2f6   :  { %7613 = vmatpush3.bf16.msra.mxu0 %v8277_v44  ;;  %7594 = vmatprep.subr.bf16.mxu1 %v8282_v45  ;;  %v8317_v44 = vld [vmem:[#allocation7 + $0xda8] sm:$0xff]   ;;  %v8322_v45 = vld [vmem:[#allocation7 + $0xd78] sm:$0xff]  }
 0x2f7   :  { %7614 = vmatprep.subr.bf16.mxu0 %v8280_v37  ;;  %v7292_v54 = vpop.f32.mrb[20].mxu1 }
 0x2f8   :  { %v7293_v56 = vpop.f32.mrb[21].mxu1 }
 0x2f9   :  { %v7294_v57 = vadd.f32 %v7293_v56, %v7292_v54  ;;  %v7295_v9 = vpop.f32.mrb[22].mxu1  ;;  %7595 = vmatpush3.bf16.msra.mxu1 %v8283_v29  ;;  %v8320_v29 = vld [vmem:[#allocation7 + $0xdf0] sm:$0xff]   ;;  %v8323_v54 = vld [vmem:[#allocation7 + $0xd38] sm:$0xff]  }
 0x2fa   :  { %7615 = vmatpush3.bf16.msra.mxu0 %v8281_v52  ;;  %v7296_v58 = vpop.f32.mrb[23].mxu1  ;;  %7596 = vmatprep.subr.bf16.mxu1 %v8286_v49  ;;  %v8326_v9 = vld [vmem:[#allocation7 + $0xe40] sm:$0xff]  }
 0x2fb   :  { %v5381_v39 = vadd.f32 %v7294_v57, %v8987_v10  ;;  %7616 = vmatprep.subr.bf16.mxu0 %v8284_v25  ;;  %v8303_v10 = vld [vmem:[#allocation7 + $0xd10] sm:$0xff]   ;;  %v8324_v58 = vld [vmem:[#allocation7 + $0xdf8] sm:$0xff]  }
 0x2fc   :  { %v7314_v48 = vpop.f32.mrb[36].mxu0  ;;  %v8321_v57 = vld [vmem:[#allocation7 + $0xdb0] sm:$0xff]  }
 0x2fd   :  { %v7315_v41 = vpop.f32.mrb[37].mxu0  ;;  %7597 = vmatpush3.bf16.msra.mxu1 %v8287_v43 }
 0x2fe   :  { %v7316_v61 = vadd.f32 %v7315_v41, %v7314_v48  ;;  %v7317_v1 = vpop.f32.mrb[38].mxu0  ;;  %7617 = vmatpush3.bf16.msra.mxu0 %v8285_v33  ;;  %7598 = vmatprep.subr.bf16.mxu1 %v8290_v59  ;;  %v8327_v59 = vld [vmem:[#allocation7 + $0xe00] sm:$0xff]   ;;  %v8331_v41 = vld [vmem:[#allocation7 + $0xe08] sm:$0xff]  }
 0x2ff   :  { %v7318_v15 = vpop.f32.mrb[39].mxu0  ;;  %7618 = vmatprep.subr.bf16.mxu0 %v8288_v46  ;;  %v8330_v46 = vld [vmem:[#allocation7 + $0xe48] sm:$0xff]   ;;  %v8328_v48 = vld [vmem:[#allocation7 + $0xec0] sm:$0xff]  }
 0x300   :  { %v8996_v0 = vadd.f32 %v7316_v61, %v5381_v39  ;;  %v8325_v39 = vld [vmem:[#allocation7 + $0xdb8] sm:$0xff]   ;;  %v1758_v61 = vcombine.high %v8894_v11, %v8894_v11  ;;  %v8332_v1 = vld [vmem:[#allocation7 + $0xec8] sm:$0xff]   ;;  %v8335_v15 = vld [vmem:[#allocation7 + $0xe10] sm:$0xff]  }
 0x301   :  { %7599 = vmatpush3.bf16.msra.mxu1 %v8291_v50  ;;  %v8329_v50 = vld [vmem:[#allocation7 + $0xe80] sm:$0xff]  }
 0x302   :  { %7619 = vmatpush3.bf16.msra.mxu0 %v8289_v53  ;;  %7628 = vmatprep.subr.bf16.mxu1 %v8294_v21  ;;  %v8334_v53 = vld [vmem:[#allocation7 + $0xe50] sm:$0xff]   ;;  %v1808_v21 = vcombine.high %v8907_v14, %v8907_v14 }
 0x303   :  { %7620 = vmatprep.subr.bf16.mxu0 %v8292_v2  ;;  %v8333_v2 = vld [vmem:[#allocation7 + $0xe88] sm:$0xff]  }
 0x304   :  { %5939 = vmatmul.mubr.bf16.vlgmr.msra.gmra.mrb[48].mxu1 %v8813_v16  ;;  %v8305_v16 = vld [vmem:[#allocation7 + $0xd90] sm:$0xff]  }
 0x305   :  { %7629 = vmatpush3.bf16.msra.mxu1 %v8295_v40  ;;  %6018 = vmatprep.mubr.bf16.mxu1 %v8902_v18  ;;  %v8311_v18 = vld [vmem:[#allocation7 + $0xd20] sm:$0xff]   ;;  %v8336_v40 = vld [vmem:[#allocation7 + $0xed0] sm:$0xff]  }
 0x306   :  { %7621 = vmatpush3.bf16.msra.mxu0 %v8293_v55  ;;  %7630 = vmatprep.subr.bf16.mxu1 %v8298_v4  ;;  %v8339_v55 = vld [vmem:[#allocation7 + $0xe18] sm:$0xff]   ;;  %v8342_v4 = vld [vmem:[#allocation7 + $0xe60] sm:$0xff]  }
 0x307   :  { %7650 = vmatprep.subr.bf16.mxu0 %v8296_v5  ;;  %v8340_v5 = vld [vmem:[#allocation7 + $0xed8] sm:$0xff]  }
 0x309   :  { %5979 = vmatmul.mubr.bf16.vlgmr.msra.gmra.mrb[64].mxu0 %v1757_v47  ;;  %7631 = vmatpush3.bf16.msra.mxu1 %v8299_v62  ;;  %v8341_v62 = vld [vmem:[#allocation7 + $0xe98] sm:$0xff]   ;;  %v8344_v47 = vld [vmem:[#allocation7 + $0xee0] sm:$0xff]  }
 0x30a   :  { %7651 = vmatpush3.bf16.msra.mxu0 %v8297_v6  ;;  %6058 = vmatprep.mubr.bf16.mxu0 %v1760_v60  ;;  %v8346_v6 = vld [vmem:[#allocation7 + $0xe68] sm:$0xff]   ;;  %v8350_v60 = vld [vmem:[#allocation7 + $0xe70] sm:$0xff]  }
 0x30b   :  { %7652 = vmatprep.subr.bf16.mxu0 %v8300_v8  ;;  %7632 = vmatprep.subr.bf16.mxu1 %v8302_v3  ;;  %v8347_v8 = vld [vmem:[#allocation7 + $0xe28] sm:$0xff]   ;;  %v8345_v3 = vld [vmem:[#allocation7 + $0xea0] sm:$0xff]  }
 0x30d   :  { %7633 = vmatpush3.bf16.msra.mxu1 %v8303_v10 }
 0x30e   :  { %7653 = vmatpush3.bf16.msra.mxu0 %v8301_v13  ;;  %7634 = vmatprep.subr.bf16.mxu1 %v8306_v63  ;;  %v8348_v13 = vld [vmem:[#allocation7 + $0xee8] sm:$0xff]  }
 0x30f   :  { %7654 = vmatprep.subr.bf16.mxu0 %v8304_v19 }
 0x311   :  { %7635 = vmatpush3.bf16.msra.mxu1 %v8307_v20 }
 0x312   :  { %7655 = vmatpush3.bf16.msra.mxu0 %v8305_v16  ;;  %7636 = vmatprep.subr.bf16.mxu1 %v8310_v24  ;;  %v8351_v16 = vld [vmem:[#allocation7 + $0xe30] sm:$0xff]  }
 0x313   :  { %7656 = vmatprep.subr.bf16.mxu0 %v8308_v12  ;;  %v8349_v12 = vld [vmem:[#allocation7 + $0xea8] sm:$0xff]  }
 0x315   :  { %7637 = vmatpush3.bf16.msra.mxu1 %v8311_v18  ;;  %v8354_v18 = vld [vmem:[#allocation7 + $0xe78] sm:$0xff]  }
 0x316   :  { %7657 = vmatpush3.bf16.msra.mxu0 %v8309_v28  ;;  %7638 = vmatprep.subr.bf16.mxu1 %v8314_v30  ;;  %v8352_v30 = vld [vmem:[#allocation7 + $0xef0] sm:$0xff]  }
 0x317   :  { %7658 = vmatprep.subr.bf16.mxu0 %v8312_v51  ;;  %v7336_v34 = vpop.f32.mrb[24].mxu1 }
 0x318   :  { %v7337_v38 = vpop.f32.mrb[25].mxu1 }
 0x319   :  { %v7338_v7 = vadd.f32 %v7337_v38, %v7336_v34  ;;  %v7339_v42 = vpop.f32.mrb[26].mxu1  ;;  %7639 = vmatpush3.bf16.msra.mxu1 %v8315_v31  ;;  %v8358_v38 = vld [vmem:[#allocation7 + $0xf40] sm:$0xff]  }
 0x31a   :  { %7659 = vmatpush3.bf16.msra.mxu0 %v8313_v32  ;;  %v7340_v17 = vpop.f32.mrb[27].mxu1  ;;  %7640 = vmatprep.subr.bf16.mxu1 %v8318_v36  ;;  %v8355_v32 = vld [vmem:[#allocation7 + $0xe38] sm:$0xff]  }
 0x31b   :  { %v5461_v37 = vadd.f32 %v7338_v7, %v8996_v0  ;;  %7660 = vmatprep.subr.bf16.mxu0 %v8316_v35  ;;  %v8338_v0 = vld [vmem:[#allocation7 + $0xe58] sm:$0xff]   ;;  %v8353_v35 = vld [vmem:[#allocation7 + $0xeb0] sm:$0xff]   ;;  %v8359_v17 = vld [vmem:[#allocation7 + $0xf00] sm:$0xff]  }
 0x31c   :  { %v7358_v52 = vpop.f32.mrb[40].mxu0  ;;  %v8356_v42 = vld [vmem:[#allocation7 + $0xef8] sm:$0xff]  }
 0x31d   :  { %v7359_v49 = vpop.f32.mrb[41].mxu0  ;;  %7641 = vmatpush3.bf16.msra.mxu1 %v8319_v22 }
 0x31e   :  { %v7360_v25 = vadd.f32 %v7359_v49, %v7358_v52  ;;  %v7361_v56 = vpop.f32.mrb[42].mxu0  ;;  %7661 = vmatpush3.bf16.msra.mxu0 %v8317_v44  ;;  %7642 = vmatprep.subr.bf16.mxu1 %v8322_v45  ;;  %v8357_v44 = vld [vmem:[#allocation7 + $0xeb8] sm:$0xff]   ;;  %v8362_v45 = vld [vmem:[#allocation7 + $0xf48] sm:$0xff]   ;;  %v8361_v52 = vld [vmem:[#allocation7 + $0xf80] sm:$0xff]   ;;  %v1806_v49 = vcombine.high %v8827_v23, %v8827_v23 }
 0x31f   :  { %v7362_v43 = vpop.f32.mrb[43].mxu0  ;;  %7662 = vmatprep.subr.bf16.mxu0 %v8320_v29  ;;  %v8363_v29 = vld [vmem:[#allocation7 + $0xf08] sm:$0xff]   ;;  %v1809_v56 = vcombine.high %v8910_v26, %v8910_v26 }
 0x320   :  { %v9005_v33 = vadd.f32 %v7360_v25, %v5461_v37  ;;  %v8360_v37 = vld [vmem:[#allocation7 + $0xfc0] sm:$0xff]   ;;  %v8366_v25 = vld [vmem:[#allocation7 + $0xf50] sm:$0xff]   ;;  %v8370_v43 = vld [vmem:[#allocation7 + $0xf58] sm:$0xff]  }
 0x321   :  { %7643 = vmatpush3.bf16.msra.mxu1 %v8323_v54  ;;  %v8364_v54 = vld [vmem:[#allocation7 + $0xfc8] sm:$0xff]  }
 0x322   :  { %7663 = vmatpush3.bf16.msra.mxu0 %v8321_v57  ;;  %7672 = vmatprep.subr.bf16.mxu1 %v8326_v9  ;;  %v8367_v57 = vld [vmem:[#allocation7 + $0xf10] sm:$0xff]   ;;  %v8365_v9 = vld [vmem:[#allocation7 + $0xf88] sm:$0xff]  }
 0x323   :  { %7664 = vmatprep.subr.bf16.mxu0 %v8324_v58  ;;  %v8368_v58 = vld [vmem:[#allocation7 + $0xfd0] sm:$0xff]  }
 0x324   :  { %6019 = vmatmul.mubr.bf16.vlgmr.msra.gmra.mrb[52].mxu1 %v8894_v11  ;;  %v8337_v11 = vld [vmem:[#allocation7 + $0xe90] sm:$0xff]  }
 0x325   :  { %7673 = vmatpush3.bf16.msra.mxu1 %v8327_v59  ;;  %6098 = vmatprep.mubr.bf16.mxu1 %v8907_v14  ;;  %v8343_v14 = vld [vmem:[#allocation7 + $0xe20] sm:$0xff]  }
 0x326   :  { %7665 = vmatpush3.bf16.msra.mxu0 %v8325_v39  ;;  %7674 = vmatprep.subr.bf16.mxu1 %v8330_v46  ;;  %v8374_v59 = vld [vmem:[#allocation7 + $0xf60] sm:$0xff]   ;;  %v8372_v39 = vld [vmem:[#allocation7 + $0xfd8] sm:$0xff]  }
 0x327   :  { %7694 = vmatprep.subr.bf16.mxu0 %v8328_v48  ;;  %v8373_v46 = vld [vmem:[#allocation7 + $0xf98] sm:$0xff]   ;;  %v8378_v48 = vld [vmem:[#allocation7 + $0xf68] sm:$0xff]  }
 0x329   :  { %6059 = vmatmul.mubr.bf16.vlgmr.msra.gmra.mrb[68].mxu0 %v1758_v61  ;;  %7675 = vmatpush3.bf16.msra.mxu1 %v8331_v41  ;;  %v8376_v41 = vld [vmem:[#allocation7 + $0xfe0] sm:$0xff]  }
 0x32a   :  { %7695 = vmatpush3.bf16.msra.mxu0 %v8329_v50  ;;  %6138 = vmatprep.mubr.bf16.mxu0 %v1808_v21  ;;  %v8379_v50 = vld [vmem:[#allocation7 + $0xf28] sm:$0xff]   ;;  %v8377_v61 = vld [vmem:[#allocation7 + $0xfa0] sm:$0xff]  }
 0x32b   :  { %7696 = vmatprep.subr.bf16.mxu0 %v8332_v1  ;;  %7676 = vmatprep.subr.bf16.mxu1 %v8334_v53  ;;  %v8382_v1 = vld [vmem:[#allocation7 + $0xf70] sm:$0xff]   ;;  %v8380_v21 = vld [vmem:[#allocation7 + $0xfe8] sm:$0xff]  }
 0x32d   :  { %7677 = vmatpush3.bf16.msra.mxu1 %v8335_v15 }
 0x32e   :  { %7697 = vmatpush3.bf16.msra.mxu0 %v8333_v2  ;;  %7678 = vmatprep.subr.bf16.mxu1 %v8338_v0 }
 0x32f   :  { %7698 = vmatprep.subr.bf16.mxu0 %v8336_v40  ;;  %v8383_v40 = vld [vmem:[#allocation7 + $0xf30] sm:$0xff]  }
 0x331   :  { %7679 = vmatpush3.bf16.msra.mxu1 %v8339_v55 }
 0x332   :  { %7699 = vmatpush3.bf16.msra.mxu0 %v8337_v11  ;;  %7680 = vmatprep.subr.bf16.mxu1 %v8342_v4  ;;  %v8381_v11 = vld [vmem:[#allocation7 + $0xfa8] sm:$0xff]   ;;  %v8386_v4 = vld [vmem:[#allocation7 + $0xf78] sm:$0xff]  }
 0x333   :  { %7700 = vmatprep.subr.bf16.mxu0 %v8340_v5 }
 0x335   :  { %7681 = vmatpush3.bf16.msra.mxu1 %v8343_v14  ;;  %v8384_v14 = vld [vmem:[#allocation7 + $0xff0] sm:$0xff]  }
 0x336   :  { %7701 = vmatpush3.bf16.msra.mxu0 %v8341_v62  ;;  %7682 = vmatprep.subr.bf16.mxu1 %v8346_v6 }
 0x337   :  { %7702 = vmatprep.subr.bf16.mxu0 %v8344_v47  ;;  %v7380_v10 = vpop.f32.mrb[28].mxu1  ;;  %v8387_v47 = vld [vmem:[#allocation7 + $0xf38] sm:$0xff]  }
 0x338   :  { %v7381_v63 = vpop.f32.mrb[29].mxu1 }
 0x339   :  { %v7382_v19 = vadd.f32 %v7381_v63, %v7380_v10  ;;  %v7383_v20 = vpop.f32.mrb[30].mxu1  ;;  %7683 = vmatpush3.bf16.msra.mxu1 %v8347_v8 }
 0x33a   :  { %7703 = vmatpush3.bf16.msra.mxu0 %v8345_v3  ;;  %v7384_v24 = vpop.f32.mrb[31].mxu1  ;;  %7684 = vmatprep.subr.bf16.mxu1 %v8350_v60  ;;  %v8385_v60 = vld [vmem:[#allocation7 + $0xfb0] sm:$0xff]   ;;  %v1807_v20 = vcombine.high %v8914_v27, %v8914_v27 }
 0x33b   :  { %v5541_v28 = vadd.f32 %v7382_v19, %v9005_v33  ;;  %7704 = vmatprep.subr.bf16.mxu0 %v8348_v13  ;;  %v8371_v33 = vld [vmem:[#allocation7 + $0xf18] sm:$0xff]  }
 0x33c   :  { %v7402_v51 = vpop.f32.mrb[44].mxu0  ;;  %v8388_v13 = vld [vmem:[#allocation7 + $0xff8] sm:$0xff]  }
 0x33d   :  { %v7403_v31 = vpop.f32.mrb[45].mxu0  ;;  %7685 = vmatpush3.bf16.msra.mxu1 %v8351_v16  ;;  %v8389_v19 = vld [vmem:[#allocation7 + $0xfb8] sm:$0xff]  }
 0x33e   :  { %v7404_v36 = vadd.f32 %v7403_v31, %v7402_v51  ;;  %v7405_v34 = vpop.f32.mrb[46].mxu0  ;;  %7705 = vmatpush3.bf16.msra.mxu0 %v8349_v12  ;;  %7686 = vmatprep.subr.bf16.mxu1 %v8354_v18 }
 0x33f   :  { %v7406_v7 = vpop.f32.mrb[47].mxu0  ;;  %7706 = vmatprep.subr.bf16.mxu0 %v8352_v30 }
 0x340   :  { %v9014_v22 = vadd.f32 %v7404_v36, %v5541_v28 }
 0x341   :  { %7687 = vmatpush3.bf16.msra.mxu1 %v8355_v32 }
 0x342   :  { %7707 = vmatpush3.bf16.msra.mxu0 %v8353_v35  ;;  %7716 = vmatprep.subr.bf16.mxu1 %v8358_v38 }
 0x343   :  { %7708 = vmatprep.subr.bf16.mxu0 %v8356_v42 }
 0x344   :  { %6099 = vmatmul.mubr.bf16.vlgmr.msra.gmra.mrb[56].mxu1 %v8827_v23  ;;  %v8369_v23 = vld [vmem:[#allocation7 + $0xf90] sm:$0xff]  }
 0x345   :  { %7717 = vmatpush3.bf16.msra.mxu1 %v8359_v17  ;;  %6178 = vmatprep.mubr.bf16.mxu1 %v8910_v26  ;;  %v8375_v26 = vld [vmem:[#allocation7 + $0xf20] sm:$0xff]  }
 0x346   :  { %7709 = vmatpush3.bf16.msra.mxu0 %v8357_v44  ;;  %7718 = vmatprep.subr.bf16.mxu1 %v8362_v45 }
 0x347   :  { %7738 = vmatprep.subr.bf16.mxu0 %v8360_v37 }
 0x349   :  { %6139 = vmatmul.mubr.bf16.vlgmr.msra.gmra.mrb[72].mxu0 %v1806_v49  ;;  %7719 = vmatpush3.bf16.msra.mxu1 %v8363_v29 }
 0x34a   :  { %7739 = vmatpush3.bf16.msra.mxu0 %v8361_v52  ;;  %6218 = vmatprep.mubr.bf16.mxu0 %v1809_v56  ;;  %v8391_v56 = vld [vmem:[#allocation8 + $0x8] sm:$0xff]  }
 0x34b   :  { %7740 = vmatprep.subr.bf16.mxu0 %v8364_v54  ;;  %7720 = vmatprep.subr.bf16.mxu1 %v8366_v25  ;;  %v8390_v54 = vld [vmem:[#allocation8] sm:$0xff]   ;;  %v8581_v25 = vmov 0.0  }
 0x34d   :  { %7721 = vmatpush3.bf16.msra.mxu1 %v8367_v57  ;;  %v8392_v57 = vld [vmem:[#allocation8 + $0x10] sm:$0xff]  }
 0x34e   :  { %7741 = vmatpush3.bf16.msra.mxu0 %v8365_v9  ;;  %7722 = vmatprep.subr.bf16.mxu1 %v8370_v43  ;;  %v8393_v9 = vld [vmem:[#allocation8 + $0x18] sm:$0xff]   ;;  %v8394_v43 = vld [vmem:[#allocation8 + $0x20] sm:$0xff]  }
 0x34f   :  { %7742 = vmatprep.subr.bf16.mxu0 %v8368_v58  ;;  %v8395_v58 = vld [vmem:[#allocation8 + $0x28] sm:$0xff]  }
 0x351   :  { %7723 = vmatpush3.bf16.msra.mxu1 %v8371_v33 }
 0x352   :  { %7743 = vmatpush3.bf16.msra.mxu0 %v8369_v23  ;;  %7724 = vmatprep.subr.bf16.mxu1 %v8374_v59 }
 0x353   :  { %7744 = vmatprep.subr.bf16.mxu0 %v8372_v39 }
 0x355   :  { %7725 = vmatpush3.bf16.msra.mxu1 %v8375_v26 }
 0x356   :  { %7745 = vmatpush3.bf16.msra.mxu0 %v8373_v46  ;;  %7726 = vmatprep.subr.bf16.mxu1 %v8378_v48 }
 0x357   :  { %7746 = vmatprep.subr.bf16.mxu0 %v8376_v41  ;;  %v7424_v53 = vpop.f32.mrb[32].mxu1 }
 0x358   :  { %v7425_v15 = vpop.f32.mrb[33].mxu1 }
 0x359   :  { %v7426_v2 = vadd.f32 %v7425_v15, %v7424_v53  ;;  %v7427_v0 = vpop.f32.mrb[34].mxu1  ;;  %7727 = vmatpush3.bf16.msra.mxu1 %v8379_v50  ;;  %v8397_v15 = vld [vmem:[#allocation8 + $0x38] sm:$0xff]  }
 0x35a   :  { %7747 = vmatpush3.bf16.msra.mxu0 %v8377_v61  ;;  %v7428_v55 = vpop.f32.mrb[35].mxu1  ;;  %7728 = vmatprep.subr.bf16.mxu1 %v8382_v1 }
 0x35b   :  { %v5621_v5 = vadd.f32 %v7426_v2, %v9014_v22  ;;  %7748 = vmatprep.subr.bf16.mxu0 %v8380_v21  ;;  %v8396_v21 = vld [vmem:[#allocation8 + $0x30] sm:$0xff]  }
 0x35c   :  { %v7446_v62 = vpop.f32.mrb[48].mxu0 }
 0x35d   :  { %v7447_v6 = vpop.f32.mrb[49].mxu0  ;;  %7729 = vmatpush3.bf16.msra.mxu1 %v8383_v40 }
 0x35e   :  { %v7448_v8 = vadd.f32 %v7447_v6, %v7446_v62  ;;  %v7449_v3 = vpop.f32.mrb[50].mxu0  ;;  %7749 = vmatpush3.bf16.msra.mxu0 %v8381_v11  ;;  %7730 = vmatprep.subr.bf16.mxu1 %v8386_v4 }
 0x35f   :  { %v7450_v10 = vpop.f32.mrb[51].mxu0  ;;  %7750 = vmatprep.subr.bf16.mxu0 %v8384_v14 }
 0x360   :  { %v5661_v63 = vadd.f32 %v7448_v8, %v5621_v5 }
 0x361   :  { %7731 = vmatpush3.bf16.msra.mxu1 %v8387_v47 }
 0x362   :  { %7751 = vmatpush3.bf16.msra.mxu0 %v8385_v60  ;;  %7810 = vmatprep.subr.bf16.mxu1 %v8581_v25 }
 0x363   :  { %7752 = vmatprep.subr.bf16.mxu0 %v8388_v13 }
 0x364   :  { %6179 = vmatmul.mubr.bf16.vlgmr.msra.gmra.mrb[60].mxu1 %v8914_v27 }
 0x365   :  { %7811 = vmatpush3.bf16.msra.mxu1 %v8390_v54  ;;  %7826 = vmatprep.mubr.msk.bf16.mxu1 %vm8582_vm0, %v8581_v25 }
 0x366   :  { %7753 = vmatpush3.bf16.msra.mxu0 %v8389_v19  ;;  %7812 = vmatprep.subr.bf16.mxu1 %v8581_v25 }
 0x367   :  { %7830 = vmatprep.subr.bf16.mxu0 %v8581_v25 }
 0x369   :  { %6219 = vmatmul.mubr.bf16.vlgmr.msra.gmra.mrb[76].mxu0 %v1807_v20  ;;  %7813 = vmatpush3.bf16.msra.mxu1 %v8391_v56 }
 0x36a   :  { %7814 = vmatprep.subr.bf16.mxu1 %v8581_v25  ;;  %7846 = vmatprep.mubr.msk.bf16.mxu0 %vm8582_vm0, %v8581_v25 }
 0x36d   :  { %7815 = vmatpush3.bf16.msra.mxu1 %v8392_v57 }
 0x36e   :  { %7816 = vmatprep.subr.bf16.mxu1 %v8581_v25 }
 0x371   :  { %7817 = vmatpush3.bf16.msra.mxu1 %v8393_v9 }
 0x372   :  { %7818 = vmatprep.subr.bf16.mxu1 %v8581_v25 }
 0x375   :  { %7819 = vmatpush3.bf16.msra.mxu1 %v8394_v43 }
 0x376   :  { %7820 = vmatprep.subr.bf16.mxu1 %v8581_v25 }
 0x377   :  { %v7468_v16 = vpop.f32.mrb[36].mxu1 }
 0x378   :  { %v7469_v24 = vpop.f32.mrb[37].mxu1 }
 0x379   :  { %v7470_v12 = vadd.f32 %v7469_v24, %v7468_v16  ;;  %v7471_v18 = vpop.f32.mrb[38].mxu1  ;;  %7821 = vmatpush3.bf16.msra.mxu1 %v8395_v58 }
 0x37a   :  { %v7472_v28 = vpop.f32.mrb[39].mxu1  ;;  %7822 = vmatprep.subr.bf16.mxu1 %v8581_v25 }
 0x37b   :  { %v5701_v30 = vadd.f32 %v7470_v12, %v5661_v63 }
 0x37c   :  { %v7490_v51 = vpop.f32.mrb[52].mxu0 }
 0x37d   :  { %v7491_v31 = vpop.f32.mrb[53].mxu0  ;;  %7823 = vmatpush3.bf16.msra.mxu1 %v8396_v21 }
 0x37e   :  { %v7492_v32 = vadd.f32 %v7491_v31, %v7490_v51  ;;  %v7493_v36 = vpop.f32.mrb[54].mxu0  ;;  %7824 = vmatprep.subr.bf16.mxu1 %v8581_v25 }
 0x37f   :  { %v7494_v34 = vpop.f32.mrb[55].mxu0 }
 0x380   :  { %v5741_v35 = vadd.f32 %v7492_v32, %v5701_v30 }
 0x381   :  { %7825 = vmatpush3.bf16.msra.mxu1 %v8397_v15 }
 0x397   :  { %v7512_v38 = vpop.f32.mrb[40].mxu1 }
 0x398   :  { %v7513_v7 = vpop.f32.mrb[41].mxu1 }
 0x399   :  { %v7514_v42 = vadd.f32 %v7513_v7, %v7512_v38  ;;  %v7515_v22 = vpop.f32.mrb[42].mxu1 }
 0x39a   :  { %v7516_v17 = vpop.f32.mrb[43].mxu1 }
 0x39b   :  { %v5781_v44 = vadd.f32 %v7514_v42, %v5741_v35 }
 0x39c   :  { %v7534_v27 = vpop.f32.mrb[56].mxu0 }
 0x39d   :  { %v7535_v45 = vpop.f32.mrb[57].mxu0 }
 0x39e   :  { %v7536_v37 = vadd.f32 %v7535_v45, %v7534_v27  ;;  %v7537_v29 = vpop.f32.mrb[58].mxu0 }
 0x39f   :  { %v7538_v52 = vpop.f32.mrb[59].mxu0 }
 0x3a0   :  { %v5821_v49 = vadd.f32 %v7536_v37, %v5781_v44 }
 0x3b7   :  { %v7556_v33 = vpop.f32.mrb[44].mxu1 }
 0x3b8   :  { %v7557_v23 = vpop.f32.mrb[45].mxu1 }
 0x3b9   :  { %v7558_v59 = vadd.f32 %v7557_v23, %v7556_v33  ;;  %v7559_v39 = vpop.f32.mrb[46].mxu1  ;;  %v8398_v33 = vld [vmem:[#allocation10] sm:$0xff]   ;;  %v8399_v23 = vld [vmem:[#allocation10 + $0x8] sm:$0xff]  }
 0x3ba   :  { %v7560_v26 = vpop.f32.mrb[47].mxu1  ;;  %7831 = vmatpush3.bf16.msra.mxu0 %v8398_v33  ;;  %v8401_v39 = vld [vmem:[#allocation10 + $0x18] sm:$0xff]  }
 0x3bb   :  { %v5861_v46 = vadd.f32 %v7558_v59, %v5821_v49  ;;  %7832 = vmatprep.subr.bf16.mxu0 %v8581_v25  ;;  %v8400_v59 = vld [vmem:[#allocation10 + $0x10] sm:$0xff]   ;;  %v8402_v26 = vld [vmem:[#allocation10 + $0x20] sm:$0xff]  }
 0x3bc   :  { %v7578_v48 = vpop.f32.mrb[60].mxu0 }
 0x3bd   :  { %v7579_v41 = vpop.f32.mrb[61].mxu0 }
 0x3be   :  { %v7580_v50 = vadd.f32 %v7579_v41, %v7578_v48  ;;  %v7581_v61 = vpop.f32.mrb[62].mxu0  ;;  %7833 = vmatpush3.bf16.msra.mxu0 %v8399_v23  ;;  %v8404_v48 = vld [vmem:[#allocation10 + $0x30] sm:$0xff]   ;;  %v8405_v41 = vld [vmem:[#allocation10 + $0x38] sm:$0xff]  }
 0x3bf   :  { %v7582_v1 = vpop.f32.mrb[63].mxu0  ;;  %7834 = vmatprep.subr.bf16.mxu0 %v8581_v25 }
 0x3c0   :  { %v5901_v53 = vadd.f32 %v7580_v50, %v5861_v46  ;;  %v8403_v46 = vld [vmem:[#allocation10 + $0x28] sm:$0xff]  }
 0x3c2   :  { %7835 = vmatpush3.bf16.msra.mxu0 %v8400_v59 }
 0x3c3   :  { %7836 = vmatprep.subr.bf16.mxu0 %v8581_v25 }
 0x3c6   :  { %7837 = vmatpush3.bf16.msra.mxu0 %v8401_v39 }
 0x3c7   :  { %7838 = vmatprep.subr.bf16.mxu0 %v8581_v25 }
 0x3ca   :  { %7839 = vmatpush3.bf16.msra.mxu0 %v8402_v26 }
 0x3cb   :  { %7840 = vmatprep.subr.bf16.mxu0 %v8581_v25 }
 0x3ce   :  { %7841 = vmatpush3.bf16.msra.mxu0 %v8403_v46 }
 0x3cf   :  { %7842 = vmatprep.subr.bf16.mxu0 %v8581_v25 }
 0x3d2   :  { %7843 = vmatpush3.bf16.msra.mxu0 %v8404_v48 }
 0x3d3   :  { %7844 = vmatprep.subr.bf16.mxu0 %v8581_v25 }
 0x3d6   :  { %7845 = vmatpush3.bf16.msra.mxu0 %v8405_v41 }
 0x3d7   :  { %v7600_v2 = vpop.f32.mrb[48].mxu1 }
 0x3d8   :  { %v7601_v0 = vpop.f32.mrb[49].mxu1 }
 0x3d9   :  { %v7602_v40 = vadd.f32 %v7601_v0, %v7600_v2  ;;  %v7603_v55 = vpop.f32.mrb[50].mxu1 }
 0x3da   :  { %v7604_v11 = vpop.f32.mrb[51].mxu1 }
 0x3db   :  { %v5941_v4 = vadd.f32 %v7602_v40, %v5901_v53 }
 0x3dc   :  { %v7622_v5 = vpop.f32.mrb[64].mxu0 }
 0x3dd   :  { %v7623_v14 = vpop.f32.mrb[65].mxu0 }
 0x3de   :  { %v7624_v62 = vadd.f32 %v7623_v14, %v7622_v5  ;;  %v7625_v6 = vpop.f32.mrb[66].mxu0 }
 0x3df   :  { %v7626_v47 = vpop.f32.mrb[67].mxu0 }
 0x3e0   :  { %v5981_v8 = vadd.f32 %v7624_v62, %v5941_v4 }
 0x3f7   :  { %v7644_v3 = vpop.f32.mrb[52].mxu1 }
 0x3f8   :  { %v7645_v60 = vpop.f32.mrb[53].mxu1 }
 0x3f9   :  { %v7646_v10 = vadd.f32 %v7645_v60, %v7644_v3  ;;  %v7647_v13 = vpop.f32.mrb[54].mxu1 }
 0x3fa   :  { %v7648_v63 = vpop.f32.mrb[55].mxu1 }
 0x3fb   :  { %v6021_v19 = vadd.f32 %v7646_v10, %v5981_v8 }
 0x3fc   :  { %v7666_v20 = vpop.f32.mrb[68].mxu0 }
 0x3fd   :  { %v7667_v16 = vpop.f32.mrb[69].mxu0 }
 0x3fe   :  { %v7668_v24 = vadd.f32 %v7667_v16, %v7666_v20  ;;  %v7669_v12 = vpop.f32.mrb[70].mxu0 }
 0x3ff   :  { %v7670_v18 = vpop.f32.mrb[71].mxu0 }
 0x400   :  { %v6061_v28 = vadd.f32 %v7668_v24, %v6021_v19  ;;  %v7031_v24 = vld [vmem:[#allocation11] ss:$0 sm:$0xff] }
 0x417   :  { %v7688_v30 = vpop.f32.mrb[56].mxu1 }
 0x418   :  { %v7689_v51 = vpop.f32.mrb[57].mxu1 }
 0x419   :  { %v7690_v31 = vadd.f32 %v7689_v51, %v7688_v30  ;;  %v7691_v32 = vpop.f32.mrb[58].mxu1 }
 0x41a   :  { %v7692_v36 = vpop.f32.mrb[59].mxu1 }
 0x41b   :  { %v6101_v34 = vadd.f32 %v7690_v31, %v6061_v28 }
 0x41c   :  { %v7710_v35 = vpop.f32.mrb[72].mxu0 }
 0x41d   :  { %v7711_v38 = vpop.f32.mrb[73].mxu0 }
 0x41e   :  { %v7712_v7 = vadd.f32 %v7711_v38, %v7710_v35  ;;  %v7713_v42 = vpop.f32.mrb[74].mxu0 }
 0x41f   :  { %v7714_v22 = vpop.f32.mrb[75].mxu0 }
 0x420   :  { %v6141_v17 = vadd.f32 %v7712_v7, %v6101_v34 }
 0x437   :  { %v7732_v44 = vpop.f32.mrb[60].mxu1 }
 0x438   :  { %v7733_v27 = vpop.f32.mrb[61].mxu1 }
 0x439   :  { %v7734_v45 = vadd.f32 %v7733_v27, %v7732_v44  ;;  %v7735_v37 = vpop.f32.mrb[62].mxu1 }
 0x43a   :  { %v7736_v29 = vpop.f32.mrb[63].mxu1 }
 0x43b   :  { %v6181_v52 = vadd.f32 %v7734_v45, %v6141_v17 }
 0x43c   :  { %v7754_v49 = vpop.f32.mrb[76].mxu0 }
 0x43d   :  { %v7755_v54 = vpop.f32.mrb[77].mxu0 }
 0x43e   :  { %v7756_v56 = vadd.f32 %v7755_v54, %v7754_v49  ;;  %v7757_v57 = vpop.f32.mrb[78].mxu0 }
 0x43f   :  { %v7758_v9 = vpop.f32.mrb[79].mxu0 }
 0x440   :  { %v6221_v43 = vadd.f32 %v7756_v56, %v6181_v52 }
 0x442   :  { %v6226_v58 = vpack.c.bf16 %v6221_v43, %v6221_v43 }
 0x444   :  { %7827 = vmatmul.mubr.bf16.vlgmr.msra.gmra.mrb[64].mxu1 %v6226_v58 }
 0x517   :  { %v6325_v50 = vpop.f32.mrb[64].mxu1 }
 0x518   :  { %v6332_v61 = vsel %vm6331_vm1, %v6325_v50, 0.0  ;;  %v7828_v1 = vpop.f32.mrb[65].mxu1 }
 0x519   :  { %v6333_v53 = vrot.slane %v6332_v61, 4  ;;  %v6328_v21 = vpop.f32.mrb[66].mxu1 }
 0x51a   :  { %v7829_v15 = vpop.f32.mrb[67].mxu1 }
 0x51b   :  { %v6334_v2 = vadd.f32 %v6333_v53, %v6332_v61 }
 0x51d   :  { %v6335_v0 = vrot.slane %v6334_v2, 2 }
 0x51f   :  { %v6336_v40 = vadd.f32 %v6335_v0, %v6334_v2 }
 0x521   :  { %v6337_v55 = vrot.slane %v6336_v40, 1 }
 0x523   :  { %v6338_v11 = vadd.f32 %v6337_v55, %v6336_v40 }
 0x525   :  { %v6340_v4 = vmul.f32 0.5, %v6338_v11 }
 0x527   :  { %v6341_v5 = vsub.f32 %v6325_v50, %v6340_v4 }
 0x529   :  { %v6342_v14 = vmul.f32 %v6341_v5, %v6341_v5 }
 0x52b   :  { %v6343_v62 = vsel %vm6331_vm1, %v6342_v14, 0.0 }
 0x52c   :  { %v6344_v6 = vrot.slane %v6343_v62, 4 }
 0x52e   :  { %v6345_v47 = vadd.f32 %v6344_v6, %v6343_v62 }
 0x530   :  { %v6346_v25 = vrot.slane %v6345_v47, 2 }
 0x532   :  { %v6347_v8 = vadd.f32 %v6346_v25, %v6345_v47 }
 0x534   :  { %v6348_v3 = vrot.slane %v6347_v8, 1 }
 0x536   :  { %v6349_v60 = vadd.f32 %v6348_v3, %v6347_v8 }
 0x538   :  { %v6350_v10 = vmul.f32 0.5, %v6349_v60 }
 0x53a   :  { %v6351_v13 = vadd.f32 1e-05, %v6350_v10 }
 0x53c   :  { %8406 = vrsqrt.f32 %v6351_v13 }
 0x546   :  { %v8407_v63 = vpop.eup %8406 }
 0x547   :  { %v6353_v19 = vmul.f32 %v8407_v63, %v6341_v5 }
 0x549   :  { %v6354_v20 = vmax.f32 %v6353_v19, 0.0 }
 0x54b   :  { %v6355_v16 = vpack.c.bf16 %v6354_v20, %v6354_v20 }
 0x54d   :  { %7847 = vmatmul.mubr.bf16.vlgmr.msra.gmra.mrb[80].mxu0 %v6355_v16 }
 0x620   :  { %v6461_v12 = vpop.f32.mrb[80].mxu0 }
 0x621   :  { %v6462_v18 = vadd.f32 %v7031_v24, %v6461_v12  ;;  %v7848_v28 = vpop.f32.mrb[81].mxu0 }
 0x622   :  { %v6464_v30 = vpop.f32.mrb[82].mxu0 }
 0x623   :  { %6467 = vst [vmem:[#allocation13] sm:$0x3] %v6462_v18  ;;  %v7849_v51 = vpop.f32.mrb[83].mxu0 }
 0x624   :  { %8551 = shalt.err (!%p8548_p10)
}
 0x625   :  { %s8552_s20 = scalar_lea.hbm %s9063_s7, 32 }
 0x626   :  { %p8553_p11 = scmp.ne.s32.totalorder %s9063_s7, %s8552_s20  ;;  %p8556_p12 = scmp.lt.u32.totalorder %s8552_s20, %s9063_s7 }
 0x628   :  { %p8558_p13 = pnand %p8556_p12, %p8553_p11 }
 0x62a   :  { %8561 = shalt.err (!%p8558_p13)
}
 0x62b   :  { %6477 = dma.vmem_to_hbm [thread:$0]  %s6475_s14, 32, %s9063_s7, [#allocation4]  }
 0x62c   :  { %8570 = dma.done.wait [#allocation4], 32  }
 0x62d   :  { %8571 = vsyncadd [#allocation4], 4294967264 }
 0x62e   :  { %6481 = vsyncpa [#allocation3], 1 }
 0x62f   :  { %6482 = vsyncpa [#allocation6], 1 }
 0x630   :  { %6483 = vsyncpa [#allocation9], 1 }
 0x631   :  { %6484 = vsyncpa [#allocation12], 1 }
 0x632   :  { %6485 = vsyncpa [#allocation4], 1 }

</bundles_post_ra>
